<compile_context>
chip_gen: v7x
topology: tpu7x:2x2x1
jax: 0.10.0
libtpu: 0.0.40
codegen_flags: <defaults>
</compile_context>

<pallas_src>
import functools

import numpy as np
import jax
import jax.numpy as jnp
from jax.experimental import pallas as pl
from jax.experimental.pallas import tpu as pltpu


def _round_up(x, m):
    return (x + m - 1) // m * m


# --------------------------------------------------------------------------- kernel
def _rx_predict_kernel(xdx_ref, xrx_ref, selm_ref, selc_ref,
                       wdx_ref, wrx_ref, w1a_ref, w1b_ref, w1c_ref, w2_ref,
                       bdx_ref, brx_ref, b1_ref, b2_ref, out_ref):
    """One tile of `bt` patients.  All matmuls: bf16 x bf16 inputs, f32 accumulation.

    xdx_ref/xrx_ref : (bt*V, H)    bf16  row b*V+v = dx / rx CLS of visit v
    selm_ref        : (bt*N, bt*V) bf16  prefix-mean weights 1/(i+1) (block-diag per patient)
    selc_ref        : (bt*N, bt*V) bf16  current-visit (i+1) one-hot picker
    wdx/wrx_ref     : (H, H)       bf16  branch MLP weights
    w1a/w1b/w1c_ref : (H, 2H)      bf16  Linear(3H->2H) split by input chunk (dxm/rxm/dxcur)
    w2_ref          : (2H, Rp)     bf16  Linear(2H->rx_voc), columns zero-padded to Rp%128==0
    bdx/brx/b1/b2   : (1, ...)     f32   biases (each full lane width of its own array)
    out_ref         : (bt*N, Rp)   f32   row b*N+i = logits for prediction step i
    """
    f32 = jnp.float32
    bf16 = jnp.bfloat16

    # Branch MLPs (Linear + ReLU): one bf16 MXU pass each, bias/ReLU in f32.
    dx = jnp.maximum(
        jnp.dot(xdx_ref[...], wdx_ref[...], preferred_element_type=f32)
        + bdx_ref[...], 0.0)                                       # (bt*V, H) f32
    rx = jnp.maximum(
        jnp.dot(xrx_ref[...], wrx_ref[...], preferred_element_type=f32)
        + brx_ref[...], 0.0)                                       # (bt*V, H) f32
    dx16 = dx.astype(bf16)
    rx16 = rx.astype(bf16)

    # Prefix means over visits 0..i and the current-visit (i+1) pick as selection
    # matmuls (bf16 operands, f32 accumulation).  rx never needs the current visit.
    dx_mean = jnp.dot(selm_ref[...], dx16, preferred_element_type=f32)   # (bt*N, H)
    rx_mean = jnp.dot(selm_ref[...], rx16, preferred_element_type=f32)   # (bt*N, H)
    dx_cur = jnp.dot(selc_ref[...], dx16, preferred_element_type=f32)    # (bt*N, H)

    # Predictor layer 1: Linear(3H -> 2H) + ReLU with no concat: three split-weight
    # matmuls accumulated in f32 (no zero-padded weight blocks, no wasted MXU depth).
    h1 = jnp.maximum(
        jnp.dot(dx_mean.astype(bf16), w1a_ref[...], preferred_element_type=f32)
        + jnp.dot(rx_mean.astype(bf16), w1b_ref[...], preferred_element_type=f32)
        + jnp.dot(dx_cur.astype(bf16), w1c_ref[...], preferred_element_type=f32)
        + b1_ref[...], 0.0)                                        # (bt*N, 2H) f32

    # Predictor layer 2: Linear(2H -> Rp).  Rp is a multiple of 128 -> lane-dense store.
    out_ref[...] = (jnp.dot(h1.astype(bf16), w2_ref[...], preferred_element_type=f32)
                    + b2_ref[...]).astype(out_ref.dtype)


# ----------------------------------------------------------------------- param pack
def init_params(key, hidden_size, rx_voc_size):
    """Synthetic params: weights stored bf16 (in, out layout), biases f32."""
    ks = jax.random.split(key, 8)
    s = 0.1

    def w(k, shape):
        return (s * jax.random.normal(k, shape, jnp.float32)).astype(jnp.bfloat16)

    def b(k, shape):
        return s * jax.random.normal(k, shape, jnp.float32)

    wdx = w(ks[0], (hidden_size, hidden_size))
    bdx = b(ks[1], (hidden_size,))
    wrx = w(ks[2], (hidden_size, hidden_size))
    brx = b(ks[3], (hidden_size,))
    w1 = w(ks[4], (3 * hidden_size, 2 * hidden_size))
    b1 = b(ks[5], (2 * hidden_size,))
    w2 = w(ks[6], (2 * hidden_size, rx_voc_size))
    b2 = b(ks[7], (rx_voc_size,))
    return (wdx, bdx, wrx, brx, w1, b1, w2, b2)


def pack_params(params, hidden_size, rx_voc_size):
    """One-time repack (done at load time, not per forward call)."""
    wdx, bdx, wrx, brx, w1, b1, w2, b2 = params
    H, H2, R = hidden_size, 2 * hidden_size, rx_voc_size
    Rp = _round_up(R, 128)
    return dict(
        wdx=wdx.astype(jnp.bfloat16),                              # (H, H)
        wrx=wrx.astype(jnp.bfloat16),                              # (H, H)
        w1a=w1[:H].astype(jnp.bfloat16),                           # (H, 2H)  acts on dx_mean
        w1b=w1[H:H2].astype(jnp.bfloat16),                         # (H, 2H)  acts on rx_mean
        w1c=w1[H2:3 * H].astype(jnp.bfloat16),                     # (H, 2H)  acts on dx_cur
        w2p=jnp.pad(w2, ((0, 0), (0, Rp - R))).astype(jnp.bfloat16),   # (2H, Rp)
        bdx=bdx.reshape(1, H).astype(jnp.float32),
        brx=brx.reshape(1, H).astype(jnp.float32),
        b1=b1.reshape(1, H2).astype(jnp.float32),
        b2p=jnp.pad(b2, (0, Rp - R)).reshape(1, Rp).astype(jnp.float32),
        hidden=H, rx_voc=R, rx_pad=Rp)


@functools.lru_cache(maxsize=None)
def _selection_matrices(bt, n_pre, n_vis):
    """Built once per (bt, N, V) with numpy; returned as resident bf16 device arrays.

    sel_mean[b*N+i, b*V+v] = 1/(i+1) for v <= i   (prefix mean over visits 0..i)
    sel_cur [b*N+i, b*V+v] = 1       for v == i+1 (current-visit pick)
    Block-diagonal per patient; kept dense per tile -> cap bt at ~32-64 (bt^2 growth).
    """
    M, K = bt * n_pre, bt * n_vis
    r = np.arange(M)
    rb, ri = r // n_pre, r % n_pre                 # patient, prediction step
    c = np.arange(K)
    cb, cv = c // n_vis, c % n_vis                 # patient, visit
    same = rb[:, None] == cb[None, :]
    prefix = np.where(same & (cv[None, :] <= ri[:, None]),
                      1.0 / (ri[:, None] + 1.0), 0.0).astype(np.float32)
    cur = np.where(same & (cv[None, :] == ri[:, None] + 1), 1.0, 0.0).astype(np.float32)
    return (jnp.asarray(prefix, dtype=jnp.bfloat16),
            jnp.asarray(cur, dtype=jnp.bfloat16))


# -------------------------------------------------------------------------- wrapper
def rx_predict_layer_batched(x, num_pre_visit, packed, *, bt=32):
    """x: (B, 2*V, H); returns (B, num_pre_visit, rx_voc) float32 logits.

    `bt` = patients per grid step (multiple of 8).  Default 32 gives MXU M = bt*N = 128
    for N=4; raise toward 64 on v6e/v7x at production batch sizes, but keep bt <= ~64
    since the resident selection operators grow as bt^2.  The patient-tile grid axis is
    "parallel" so multiple tiles shard across v7x's two TensorCores.
    """
    assert bt > 0 and bt % 8 == 0
    B, twoV, H = x.shape
    assert H == packed["hidden"]
    assert twoV % 2 == 0
    V = twoV // 2
    N = int(num_pre_visit)
    assert 1 <= N <= V - 1, "need num_pre_visit + 1 <= visits per branch"
    H2, R, Rp = 2 * H, packed["rx_voc"], packed["rx_pad"]

    # Clamp the tile for small batches (stays a multiple of 8).
    bt = min(bt, _round_up(B, 8))
    Bp = _round_up(B, bt)

    # Two contiguous half-slices (== input.view(2, -1, H) rows 0..V-1 / V..2V-1);
    # no concatenate / column packing, only the batch pad (if any) copies data.
    x_dx = x[:, :V, :].astype(jnp.bfloat16)
    x_rx = x[:, V:, :].astype(jnp.bfloat16)
    if Bp != B:
        pad = ((0, Bp - B), (0, 0), (0, 0))
        x_dx = jnp.pad(x_dx, pad)
        x_rx = jnp.pad(x_rx, pad)
    x_dx = x_dx.reshape(Bp * V, H)
    x_rx = x_rx.reshape(Bp * V, H)

    sel_mean, sel_cur = _selection_matrices(bt, N, V)     # cached, bf16, resident

    resident = lambda i: (0, 0)                           # fetched once, stays in VMEM
    out = pl.pallas_call(
        _rx_predict_kernel,
        out_shape=jax.ShapeDtypeStruct((Bp * N, Rp), jnp.float32),
        grid=(Bp // bt,),
        in_specs=[
            pl.BlockSpec((bt * V, H), lambda i: (i, 0)),        # x_dx patient tile
            pl.BlockSpec((bt * V, H), lambda i: (i, 0)),        # x_rx patient tile
            pl.BlockSpec((bt * N, bt * V), resident),           # prefix-mean operator
            pl.BlockSpec((bt * N, bt * V), resident),           # current-visit picker
            pl.BlockSpec((H, H), resident),                     # wdx
            pl.BlockSpec((H, H), resident),                     # wrx
            pl.BlockSpec((H, H2), resident),                    # w1a
            pl.BlockSpec((H, H2), resident),                    # w1b
            pl.BlockSpec((H, H2), resident),                    # w1c
            pl.BlockSpec((H2, Rp), resident),                   # w2 (padded)
            pl.BlockSpec((1, H), resident),                     # bdx
            pl.BlockSpec((1, H), resident),                     # brx
            pl.BlockSpec((1, H2), resident),                    # b1
            pl.BlockSpec((1, Rp), resident),                    # b2 (padded)
        ],
        out_specs=pl.BlockSpec((bt * N, Rp), lambda i: (i, 0)),
        compiler_params=pltpu.CompilerParams(
            dimension_semantics=("parallel",),
            # VMEM budget: 2 x (bt*V, H) bf16 + (bt*N, Rp) f32 tiles (double-buffered)
            # + resident sel/weights — a few MiB even at bt=64 / production H, well
            # inside v7x's 64 MiB; limit set explicitly for headroom.
            vmem_limit_bytes=64 * 1024 * 1024),
    )(x_dx, x_rx, sel_mean, sel_cur,
      packed["wdx"], packed["wrx"], packed["w1a"], packed["w1b"], packed["w1c"],
      packed["w2p"], packed["bdx"], packed["brx"], packed["b1"], packed["b2p"])

    # Drop batch padding and rx_voc lane padding outside the kernel.
    return out.reshape(Bp, N, Rp)[:B, :, :R]


def rx_predict_layer(x, num_pre_visit, packed, *, bt=32):
    """Single-patient forward matching the PyTorch module: x is (2*V, H)."""
    return rx_predict_layer_batched(x[None], num_pre_visit, packed, bt=bt)[0]


# ------------------------------------------------------------------------ reference
def _reference(x_batch, num_pre_visit, params):
    """Pure-JAX f32 reference mirroring the PyTorch forward loop, per patient."""
    wdx, bdx, wrx, brx, w1, b1, w2, b2 = [p.astype(jnp.float32) for p in params]
    outs = []
    for bidx in range(x_batch.shape[0]):
        xb = x_batch[bidx].astype(jnp.float32)
        bert_cls = xb.reshape(2, -1, xb.shape[-1])
        dx = jax.nn.relu(bert_cls[0] @ wdx + bdx)
        rx = jax.nn.relu(bert_cls[1] @ wrx + brx)
        logits = []
        for i in range(num_pre_visit):
            dxm = jnp.mean(dx[0:i + 1], axis=0, keepdims=True)
            rxm = jnp.mean(rx[0:i + 1], axis=0, keepdims=True)
            cc = jnp.concatenate([dxm, rxm, dx[i + 1:i + 2]], axis=-1)
            h = jax.nn.relu(cc @ w1 + b1)
            logits.append(h @ w2 + b2)
        outs.append(jnp.concatenate(logits, axis=0))
    return jnp.stack(outs, axis=0)


if __name__ == "__main__":
    key = jax.random.PRNGKey(0)
    k1, k2, k3, kp = jax.random.split(key, 4)

    hidden_size = 32
    rx_voc_size = 40
    num_pre_visit = 4
    V = num_pre_visit + 1

    params = init_params(kp, hidden_size, rx_voc_size)
    packed = pack_params(params, hidden_size, rx_voc_size)

    # bf16 matmul inputs end-to-end (f32 accumulation) vs. an f32 reference ->
    # tolerance reflects a few chained bf16 roundings (~1%), not structural error.
    tol = dict(rtol=2e-2, atol=2e-2)

    # 1) Batched forward: B=20 patients in one fat tile (padded rows sliced off).
    B = 20
    x = jax.random.normal(k1, (B, 2 * V, hidden_size), jnp.float32).astype(jnp.bfloat16)
    out = jax.block_until_ready(rx_predict_layer_batched(x, num_pre_visit, packed))
    ref = _reference(x, num_pre_visit, params)
    assert out.shape == (B, num_pre_visit, rx_voc_size)
    assert jnp.allclose(out, ref, **tol), "batched mismatch vs reference"

    # 2) Single patient with extra (unused) visits: V > num_pre_visit + 1.
    V2 = num_pre_visit + 3
    x1 = jax.random.normal(k2, (2 * V2, hidden_size), jnp.float32).astype(jnp.bfloat16)
    out1 = jax.block_until_ready(rx_predict_layer(x1, num_pre_visit, packed))
    ref1 = _reference(x1[None], num_pre_visit, params)[0]
    assert out1.shape == (num_pre_visit, rx_voc_size)
    assert jnp.allclose(out1, ref1, **tol), "single-patient mismatch"

    # 3) Multi-step grid (3 patient tiles) with resident weights reused across steps.
    B3 = 24
    x3 = jax.random.normal(k3, (B3, 2 * V, hidden_size), jnp.float32).astype(jnp.bfloat16)
    out3 = jax.block_until_ready(
        rx_predict_layer_batched(x3, num_pre_visit, packed, bt=8))
    ref3 = _reference(x3, num_pre_visit, params)
    assert jnp.allclose(out3, ref3, **tol), "multi-tile mismatch vs reference"

    print("KERNEL_OK")
</pallas_src>

<mosaic_0001>
module attributes {stable_mosaic.version = 11 : i64} {
  func.func @_rx_predict_kernel(%arg0: i32, %arg1: memref<120x32xbf16, #tpu.memory_space<vmem>>, %arg2: memref<120x32xbf16, #tpu.memory_space<vmem>>, %arg3: memref<96x120xbf16, #tpu.memory_space<vmem>>, %arg4: memref<96x120xbf16, #tpu.memory_space<vmem>>, %arg5: memref<32x32xbf16, #tpu.memory_space<vmem>>, %arg6: memref<32x32xbf16, #tpu.memory_space<vmem>>, %arg7: memref<32x64xbf16, #tpu.memory_space<vmem>>, %arg8: memref<32x64xbf16, #tpu.memory_space<vmem>>, %arg9: memref<32x64xbf16, #tpu.memory_space<vmem>>, %arg10: memref<64x128xbf16, #tpu.memory_space<vmem>>, %arg11: memref<1x32xf32, #tpu.memory_space<vmem>>, %arg12: memref<1x32xf32, #tpu.memory_space<vmem>>, %arg13: memref<1x64xf32, #tpu.memory_space<vmem>>, %arg14: memref<1x128xf32, #tpu.memory_space<vmem>>, %arg15: memref<96x128xf32, #tpu.memory_space<vmem>>) attributes {dimension_semantics = [#tpu.dimension_semantics<parallel>], iteration_bounds = array<i64: 1>, scalar_prefetch = 0 : i64, scratch_operands = 0 : i64, tpu.core_type = #tpu.core_type<tc>, window_params = [{transform_indices = @transform_0, window_bounds = array<i64: 120, 32>}, {transform_indices = @transform_1, window_bounds = array<i64: 120, 32>}, {pipeline_mode = #tpu.pipeline_mode<synchronous>, transform_indices = @transform_2, window_bounds = array<i64: 96, 120>}, {pipeline_mode = #tpu.pipeline_mode<synchronous>, transform_indices = @transform_3, window_bounds = array<i64: 96, 120>}, {pipeline_mode = #tpu.pipeline_mode<synchronous>, transform_indices = @transform_4, window_bounds = array<i64: 32, 32>}, {pipeline_mode = #tpu.pipeline_mode<synchronous>, transform_indices = @transform_5, window_bounds = array<i64: 32, 32>}, {pipeline_mode = #tpu.pipeline_mode<synchronous>, transform_indices = @transform_6, window_bounds = array<i64: 32, 64>}, {pipeline_mode = #tpu.pipeline_mode<synchronous>, transform_indices = @transform_7, window_bounds = array<i64: 32, 64>}, {pipeline_mode = #tpu.pipeline_mode<synchronous>, transform_indices = @transform_8, window_bounds = array<i64: 32, 64>}, {pipeline_mode = #tpu.pipeline_mode<synchronous>, transform_indices = @transform_9, window_bounds = array<i64: 64, 128>}, {pipeline_mode = #tpu.pipeline_mode<synchronous>, transform_indices = @transform_10, window_bounds = array<i64: 1, 32>}, {pipeline_mode = #tpu.pipeline_mode<synchronous>, transform_indices = @transform_11, window_bounds = array<i64: 1, 32>}, {pipeline_mode = #tpu.pipeline_mode<synchronous>, transform_indices = @transform_12, window_bounds = array<i64: 1, 64>}, {pipeline_mode = #tpu.pipeline_mode<synchronous>, transform_indices = @transform_13, window_bounds = array<i64: 1, 128>}, {transform_indices = @transform_14, window_bounds = array<i64: 96, 128>}]} {
    %c0 = arith.constant 0 : index
    %c0_0 = arith.constant 0 : index
    %0 = vector.load %arg1[%c0, %c0_0] : memref<120x32xbf16, #tpu.memory_space<vmem>>, vector<120x32xbf16>
    %c0_1 = arith.constant 0 : index
    %c0_2 = arith.constant 0 : index
    %1 = vector.load %arg5[%c0_1, %c0_2] : memref<32x32xbf16, #tpu.memory_space<vmem>>, vector<32x32xbf16>
    %cst = arith.constant dense<0.000000e+00> : vector<120x32xf32>
    %2 = tpu.matmul %0, %1, %cst {dimension_numbers = #tpu.dot_dimension_numbers<[1], [0], [0], [1], [0, 0, 1, 1], [], []>} : vector<120x32xbf16>, vector<32x32xbf16>, vector<120x32xf32> -> vector<120x32xf32>
    %c0_3 = arith.constant 0 : index
    %c0_4 = arith.constant 0 : index
    %3 = vector.load %arg11[%c0_3, %c0_4] : memref<1x32xf32, #tpu.memory_space<vmem>>, vector<1x32xf32>
    %4 = vector.broadcast %3 : vector<1x32xf32> to vector<120x32xf32>
    %5 = arith.addf %2, %4 : vector<120x32xf32>
    %cst_5 = arith.constant 0.000000e+00 : f32
    %6 = vector.broadcast %cst_5 : f32 to vector<120x32xf32>
    %7 = arith.maximumf %5, %6 : vector<120x32xf32>
    %c0_6 = arith.constant 0 : index
    %c0_7 = arith.constant 0 : index
    %8 = vector.load %arg2[%c0_6, %c0_7] : memref<120x32xbf16, #tpu.memory_space<vmem>>, vector<120x32xbf16>
    %c0_8 = arith.constant 0 : index
    %c0_9 = arith.constant 0 : index
    %9 = vector.load %arg6[%c0_8, %c0_9] : memref<32x32xbf16, #tpu.memory_space<vmem>>, vector<32x32xbf16>
    %cst_10 = arith.constant dense<0.000000e+00> : vector<120x32xf32>
    %10 = tpu.matmul %8, %9, %cst_10 {dimension_numbers = #tpu.dot_dimension_numbers<[1], [0], [0], [1], [0, 0, 1, 1], [], []>} : vector<120x32xbf16>, vector<32x32xbf16>, vector<120x32xf32> -> vector<120x32xf32>
    %c0_11 = arith.constant 0 : index
    %c0_12 = arith.constant 0 : index
    %11 = vector.load %arg12[%c0_11, %c0_12] : memref<1x32xf32, #tpu.memory_space<vmem>>, vector<1x32xf32>
    %12 = vector.broadcast %11 : vector<1x32xf32> to vector<120x32xf32>
    %13 = arith.addf %10, %12 : vector<120x32xf32>
    %cst_13 = arith.constant 0.000000e+00 : f32
    %14 = vector.broadcast %cst_13 : f32 to vector<120x32xf32>
    %15 = arith.maximumf %13, %14 : vector<120x32xf32>
    %16 = arith.truncf %7 : vector<120x32xf32> to vector<120x32xbf16>
    %17 = arith.truncf %15 : vector<120x32xf32> to vector<120x32xbf16>
    %c0_14 = arith.constant 0 : index
    %c0_15 = arith.constant 0 : index
    %18 = vector.load %arg3[%c0_14, %c0_15] : memref<96x120xbf16, #tpu.memory_space<vmem>>, vector<96x120xbf16>
    %cst_16 = arith.constant dense<0.000000e+00> : vector<96x32xf32>
    %19 = tpu.matmul %18, %16, %cst_16 {dimension_numbers = #tpu.dot_dimension_numbers<[1], [0], [0], [1], [0, 0, 1, 1], [], []>} : vector<96x120xbf16>, vector<120x32xbf16>, vector<96x32xf32> -> vector<96x32xf32>
    %c0_17 = arith.constant 0 : index
    %c0_18 = arith.constant 0 : index
    %20 = vector.load %arg3[%c0_17, %c0_18] : memref<96x120xbf16, #tpu.memory_space<vmem>>, vector<96x120xbf16>
    %cst_19 = arith.constant dense<0.000000e+00> : vector<96x32xf32>
    %21 = tpu.matmul %20, %17, %cst_19 {dimension_numbers = #tpu.dot_dimension_numbers<[1], [0], [0], [1], [0, 0, 1, 1], [], []>} : vector<96x120xbf16>, vector<120x32xbf16>, vector<96x32xf32> -> vector<96x32xf32>
    %c0_20 = arith.constant 0 : index
    %c0_21 = arith.constant 0 : index
    %22 = vector.load %arg4[%c0_20, %c0_21] : memref<96x120xbf16, #tpu.memory_space<vmem>>, vector<96x120xbf16>
    %cst_22 = arith.constant dense<0.000000e+00> : vector<96x32xf32>
    %23 = tpu.matmul %22, %16, %cst_22 {dimension_numbers = #tpu.dot_dimension_numbers<[1], [0], [0], [1], [0, 0, 1, 1], [], []>} : vector<96x120xbf16>, vector<120x32xbf16>, vector<96x32xf32> -> vector<96x32xf32>
    %24 = arith.truncf %19 : vector<96x32xf32> to vector<96x32xbf16>
    %c0_23 = arith.constant 0 : index
    %c0_24 = arith.constant 0 : index
    %25 = vector.load %arg7[%c0_23, %c0_24] : memref<32x64xbf16, #tpu.memory_space<vmem>>, vector<32x64xbf16>
    %cst_25 = arith.constant dense<0.000000e+00> : vector<96x64xf32>
    %26 = tpu.matmul %24, %25, %cst_25 {dimension_numbers = #tpu.dot_dimension_numbers<[1], [0], [0], [1], [0, 0, 1, 1], [], []>} : vector<96x32xbf16>, vector<32x64xbf16>, vector<96x64xf32> -> vector<96x64xf32>
    %27 = arith.truncf %21 : vector<96x32xf32> to vector<96x32xbf16>
    %c0_26 = arith.constant 0 : index
    %c0_27 = arith.constant 0 : index
    %28 = vector.load %arg8[%c0_26, %c0_27] : memref<32x64xbf16, #tpu.memory_space<vmem>>, vector<32x64xbf16>
    %cst_28 = arith.constant dense<0.000000e+00> : vector<96x64xf32>
    %29 = tpu.matmul %27, %28, %cst_28 {dimension_numbers = #tpu.dot_dimension_numbers<[1], [0], [0], [1], [0, 0, 1, 1], [], []>} : vector<96x32xbf16>, vector<32x64xbf16>, vector<96x64xf32> -> vector<96x64xf32>
    %30 = arith.addf %26, %29 : vector<96x64xf32>
    %31 = arith.truncf %23 : vector<96x32xf32> to vector<96x32xbf16>
    %c0_29 = arith.constant 0 : index
    %c0_30 = arith.constant 0 : index
    %32 = vector.load %arg9[%c0_29, %c0_30] : memref<32x64xbf16, #tpu.memory_space<vmem>>, vector<32x64xbf16>
    %cst_31 = arith.constant dense<0.000000e+00> : vector<96x64xf32>
    %33 = tpu.matmul %31, %32, %cst_31 {dimension_numbers = #tpu.dot_dimension_numbers<[1], [0], [0], [1], [0, 0, 1, 1], [], []>} : vector<96x32xbf16>, vector<32x64xbf16>, vector<96x64xf32> -> vector<96x64xf32>
    %34 = arith.addf %30, %33 : vector<96x64xf32>
    %c0_32 = arith.constant 0 : index
    %c0_33 = arith.constant 0 : index
    %35 = vector.load %arg13[%c0_32, %c0_33] : memref<1x64xf32, #tpu.memory_space<vmem>>, vector<1x64xf32>
    %36 = vector.broadcast %35 : vector<1x64xf32> to vector<96x64xf32>
    %37 = arith.addf %34, %36 : vector<96x64xf32>
    %cst_34 = arith.constant 0.000000e+00 : f32
    %38 = vector.broadcast %cst_34 : f32 to vector<96x64xf32>
    %39 = arith.maximumf %37, %38 : vector<96x64xf32>
    %40 = arith.truncf %39 : vector<96x64xf32> to vector<96x64xbf16>
    %c0_35 = arith.constant 0 : index
    %c0_36 = arith.constant 0 : index
    %41 = vector.load %arg10[%c0_35, %c0_36] : memref<64x128xbf16, #tpu.memory_space<vmem>>, vector<64x128xbf16>
    %cst_37 = arith.constant dense<0.000000e+00> : vector<96x128xf32>
    %42 = tpu.matmul %40, %41, %cst_37 {dimension_numbers = #tpu.dot_dimension_numbers<[1], [0], [0], [1], [0, 0, 1, 1], [], []>} : vector<96x64xbf16>, vector<64x128xbf16>, vector<96x128xf32> -> vector<96x128xf32>
    %c0_38 = arith.constant 0 : index
    %c0_39 = arith.constant 0 : index
    %43 = vector.load %arg14[%c0_38, %c0_39] : memref<1x128xf32, #tpu.memory_space<vmem>>, vector<1x128xf32>
    %44 = vector.broadcast %43 : vector<1x128xf32> to vector<96x128xf32>
    %45 = arith.addf %42, %44 : vector<96x128xf32>
    %c0_40 = arith.constant 0 : index
    %c0_41 = arith.constant 0 : index
    %46 = vector.load %arg15[%c0_40, %c0_41] : memref<96x128xf32, #tpu.memory_space<vmem>>, vector<96x128xf32>
    tpu.vector_store %arg15[%c0_40, %c0_41], %45 {strides = array<i32>} : memref<96x128xf32, #tpu.memory_space<vmem>>, vector<96x128xf32>,
    return
  }
  func.func @transform_0(%arg0: i32) -> (i32, i32) {
    %c0_i32 = arith.constant 0 : i32
    %c0_i32_0 = arith.constant 0 : i32
    return %arg0, %c0_i32 : i32, i32
  }
  func.func @transform_1(%arg0: i32) -> (i32, i32) {
    %c0_i32 = arith.constant 0 : i32
    %c0_i32_0 = arith.constant 0 : i32
    return %arg0, %c0_i32 : i32, i32
  }
  func.func @transform_2(%arg0: i32) -> (i32, i32) {
    %c0_i32 = arith.constant 0 : i32
    %c0_i32_0 = arith.constant 0 : i32
    %c0_i32_1 = arith.constant 0 : i32
    return %c0_i32, %c0_i32_0 : i32, i32
  }
  func.func @transform_3(%arg0: i32) -> (i32, i32) {
    %c0_i32 = arith.constant 0 : i32
    %c0_i32_0 = arith.constant 0 : i32
    %c0_i32_1 = arith.constant 0 : i32
    return %c0_i32, %c0_i32_0 : i32, i32
  }
  func.func @transform_4(%arg0: i32) -> (i32, i32) {
    %c0_i32 = arith.constant 0 : i32
    %c0_i32_0 = arith.constant 0 : i32
    %c0_i32_1 = arith.constant 0 : i32
    return %c0_i32, %c0_i32_0 : i32, i32
  }
  func.func @transform_5(%arg0: i32) -> (i32, i32) {
    %c0_i32 = arith.constant 0 : i32
    %c0_i32_0 = arith.constant 0 : i32
    %c0_i32_1 = arith.constant 0 : i32
    return %c0_i32, %c0_i32_0 : i32, i32
  }
  func.func @transform_6(%arg0: i32) -> (i32, i32) {
    %c0_i32 = arith.constant 0 : i32
    %c0_i32_0 = arith.constant 0 : i32
    %c0_i32_1 = arith.constant 0 : i32
    return %c0_i32, %c0_i32_0 : i32, i32
  }
  func.func @transform_7(%arg0: i32) -> (i32, i32) {
    %c0_i32 = arith.constant 0 : i32
    %c0_i32_0 = arith.constant 0 : i32
    %c0_i32_1 = arith.constant 0 : i32
    return %c0_i32, %c0_i32_0 : i32, i32
  }
  func.func @transform_8(%arg0: i32) -> (i32, i32) {
    %c0_i32 = arith.constant 0 : i32
    %c0_i32_0 = arith.constant 0 : i32
    %c0_i32_1 = arith.constant 0 : i32
    return %c0_i32, %c0_i32_0 : i32, i32
  }
  func.func @transform_9(%arg0: i32) -> (i32, i32) {
    %c0_i32 = arith.constant 0 : i32
    %c0_i32_0 = arith.constant 0 : i32
    %c0_i32_1 = arith.constant 0 : i32
    return %c0_i32, %c0_i32_0 : i32, i32
  }
  func.func @transform_10(%arg0: i32) -> (i32, i32) {
    %c0_i32 = arith.constant 0 : i32
    %c0_i32_0 = arith.constant 0 : i32
    %c0_i32_1 = arith.constant 0 : i32
    return %c0_i32, %c0_i32_0 : i32, i32
  }
  func.func @transform_11(%arg0: i32) -> (i32, i32) {
    %c0_i32 = arith.constant 0 : i32
    %c0_i32_0 = arith.constant 0 : i32
    %c0_i32_1 = arith.constant 0 : i32
    return %c0_i32, %c0_i32_0 : i32, i32
  }
  func.func @transform_12(%arg0: i32) -> (i32, i32) {
    %c0_i32 = arith.constant 0 : i32
    %c0_i32_0 = arith.constant 0 : i32
    %c0_i32_1 = arith.constant 0 : i32
    return %c0_i32, %c0_i32_0 : i32, i32
  }
  func.func @transform_13(%arg0: i32) -> (i32, i32) {
    %c0_i32 = arith.constant 0 : i32
    %c0_i32_0 = arith.constant 0 : i32
    %c0_i32_1 = arith.constant 0 : i32
    return %c0_i32, %c0_i32_0 : i32, i32
  }
  func.func @transform_14(%arg0: i32) -> (i32, i32) {
    %c0_i32 = arith.constant 0 : i32
    %c0_i32_0 = arith.constant 0 : i32
    return %arg0, %c0_i32 : i32, i32
  }
}

</mosaic_0001>

<bundles_post_ra>
// kernel: tpu_custom_call.1
= control target key start
LH: loop header
LB: loop body
LE: loop exit
PB: predicated region body
PF: predicated region fallthrough
CT: control target
= control target key end

     0   :  { %19 = vsyncpa [#allocation3], 0  ;;  %s2921_s0 = inlined_call_operand.hbm [shape: bf16[120,32], index: 0, kind: input, shape index: {}]   ;;  %s2922_s1 = inlined_call_operand.hbm [shape: bf16[120,32], index: 1, kind: input, shape index: {}]   ;;  %s2923_s2 = inlined_call_operand.hbm [shape: bf16[96,120], index: 2, kind: input, shape index: {}]   ;;  %s2924_s3 = inlined_call_operand.hbm [shape: bf16[96,120], index: 3, kind: input, shape index: {}]   ;;  %s2925_s4 = inlined_call_operand.hbm [shape: bf16[32,32], index: 4, kind: input, shape index: {}]   ;;  %s2926_s5 = inlined_call_operand.hbm [shape: bf16[32,32], index: 5, kind: input, shape index: {}]   ;;  %s2927_s6 = inlined_call_operand.hbm [shape: bf16[32,64], index: 6, kind: input, shape index: {}]   ;;  %s2928_s7 = inlined_call_operand.hbm [shape: bf16[32,64], index: 7, kind: input, shape index: {}]   ;;  %s2929_s8 = inlined_call_operand.hbm [shape: bf16[32,64], index: 8, kind: input, shape index: {}]   ;;  %s2930_s9 = inlined_call_operand.hbm [shape: bf16[64,128], index: 9, kind: input, shape index: {}]   ;;  %s2931_s10 = inlined_call_operand.hbm [shape: f32[1,32], index: 10, kind: input, shape index: {}]   ;;  %s2932_s11 = inlined_call_operand.hbm [shape: f32[1,32], index: 11, kind: input, shape index: {}]   ;;  %s2933_s12 = inlined_call_operand.hbm [shape: f32[1,64], index: 12, kind: input, shape index: {}]   ;;  %s2934_s13 = inlined_call_operand.hbm [shape: f32[1,128], index: 13, kind: input, shape index: {}]   ;;  %s2935_s14 = inlined_call_operand.hbm [shape: f32[96,128], index: 14, kind: output, shape index: {}]  }
   0x1   :  { %20 = vsyncpa [#allocation6], 0 }
   0x2   :  { %21 = vsyncpa [#allocation9], 0 }
   0x3   :  { %22 = vsyncpa [#allocation12], 0 }
   0x4   :  { %23 = vsyncpa [#allocation15], 0 }
   0x5   :  { %24 = vsyncpa [#allocation18], 0 }
   0x6   :  { %25 = vsyncpa [#allocation21], 0 }
   0x7   :  { %26 = vsyncpa [#allocation24], 0 }
   0x8   :  { %27 = vsyncpa [#allocation4], 0  ;;  %s2456_s29 = smov [#allocation5]   ;;  %s2457_s15 = smov [#allocation8]  }
   0x9   :  { %s45_s30 = sshll.u32 %s2456_s29, 4  ;;  %s69_s16 = sshll.u32 %s2457_s15, 4  ;;  %s46_s30 = int_to_ptr.vmem [resolvable:$true] %s45_s30  ;;  %s2550_s16 = int_to_ptr.vmem [resolvable:$true] %s69_s16 }
   0xa   :  { %s2108_s19 = scalar_lea.hbm %s2922_s1, 960 }
   0xb   :  { %p2109_p0 = scmp.ne.s32.totalorder %s2922_s1, %s2108_s19  ;;  %p2112_p1 = scmp.lt.u32.totalorder %s2108_s19, %s2922_s1 }
   0xd   :  { %p2114_p2 = pnand %p2112_p1, %p2109_p0 }
   0xf   :  { %2117 = shalt.err (!%p2114_p2)
}
  0x10   :  { %s2118_s24 = scalar_lea.vmem %s46_s30, 960  ;;  %p2123_p4 = scmp.lt.s32.totalorder %s46_s30, %s46_s30 }
  0x11   :  { %p2119_p3 = scmp.ne.s32.totalorder %s46_s30, %s2118_s24  ;;  %p2124_p5 = scmp.lt.s32.totalorder %s2118_s24, %s2118_s24 }
  0x13   :  { %p2125_p6 = por %p2124_p5, %p2123_p4 }
  0x15   :  { %p2126_p7 = pnand %p2125_p6, %p2119_p3 }
  0x17   :  { %2129 = shalt.err (!%p2126_p7)
}
  0x18   :  { %s2458_s25 = smov 64   ;;  %s2459_s26 = smov 4  }
  0x19   :  { %51 = dma.hbm_to_vmem [thread:$0]  %s2922_s1, 960, %s46_s30, [#allocation6], %s2458_s25, %s2458_s25, %s2459_s26  }
  0x1a   :  { %s2130_s17 = scalar_lea.hbm %s2924_s3, 768 }
  0x1b   :  { %p2131_p8 = scmp.ne.s32.totalorder %s2924_s3, %s2130_s17  ;;  %p2134_p9 = scmp.lt.u32.totalorder %s2130_s17, %s2924_s3 }
  0x1d   :  { %p2136_p10 = pnand %p2134_p9, %p2131_p8 }
  0x1f   :  { %2139 = shalt.err (!%p2136_p10)
}
  0x20   :  { %s2140_s22 = scalar_lea.vmem %s2550_s16, 768  ;;  %p2145_p12 = scmp.lt.s32.totalorder %s2550_s16, %s2550_s16 }
  0x21   :  { %p2141_p11 = scmp.ne.s32.totalorder %s2550_s16, %s2140_s22  ;;  %p2146_p13 = scmp.lt.s32.totalorder %s2140_s22, %s2140_s22 }
  0x23   :  { %p2147_p0 = por %p2146_p13, %p2145_p12 }
  0x25   :  { %p2148_p1 = pnand %p2147_p0, %p2141_p11 }
  0x27   :  { %2151 = shalt.err (!%p2148_p1)
}
  0x28   :  { %75 = dma.hbm_to_vmem [thread:$0]  %s2924_s3, 768, %s2550_s16, [#allocation9], %s2458_s25, %s2458_s25, %s2459_s26  }
  0x29   :  { %s2460_s23 = smov [#allocation11]   ;;  %s2461_s27 = smov [#allocation14]  }
  0x2a   :  { %s93_s24 = sshll.u32 %s2460_s23, 4  ;;  %s117_s28 = sshll.u32 %s2461_s27, 4  ;;  %s94_s24 = int_to_ptr.vmem [resolvable:$true] %s93_s24  ;;  %s2587_s28 = int_to_ptr.vmem [resolvable:$true] %s117_s28 }
  0x2b   :  { %s2152_s17 = scalar_lea.hbm %s2926_s5, 256 }
  0x2c   :  { %p2153_p2 = scmp.ne.s32.totalorder %s2926_s5, %s2152_s17  ;;  %p2156_p3 = scmp.lt.u32.totalorder %s2152_s17, %s2926_s5 }
  0x2e   :  { %p2158_p4 = pnand %p2156_p3, %p2153_p2 }
  0x30   :  { %2161 = shalt.err (!%p2158_p4)
}
  0x31   :  { %s2162_s3 = scalar_lea.vmem %s94_s24, 256  ;;  %p2167_p6 = scmp.lt.s32.totalorder %s94_s24, %s94_s24 }
  0x32   :  { %p2163_p5 = scmp.ne.s32.totalorder %s94_s24, %s2162_s3  ;;  %p2168_p7 = scmp.lt.s32.totalorder %s2162_s3, %s2162_s3 }
  0x34   :  { %p2169_p8 = por %p2168_p7, %p2167_p6 }
  0x36   :  { %p2170_p9 = pnand %p2169_p8, %p2163_p5 }
  0x38   :  { %2173 = shalt.err (!%p2170_p9)
}
  0x39   :  { %99 = dma.hbm_to_vmem [thread:$0]  %s2926_s5, 256, %s94_s24, [#allocation12], %s2458_s25, %s2458_s25, %s2459_s26  }
  0x3a   :  { %s2174_s23 = scalar_lea.hbm %s2928_s7, 256 }
  0x3b   :  { %p2175_p10 = scmp.ne.s32.totalorder %s2928_s7, %s2174_s23  ;;  %p2178_p11 = scmp.lt.u32.totalorder %s2174_s23, %s2928_s7 }
  0x3d   :  { %p2180_p12 = pnand %p2178_p11, %p2175_p10 }
  0x3f   :  { %2183 = shalt.err (!%p2180_p12)
}
  0x40   :  { %s2184_s18 = scalar_lea.vmem %s2587_s28, 256  ;;  %p2189_p0 = scmp.lt.s32.totalorder %s2587_s28, %s2587_s28 }
  0x41   :  { %p2185_p13 = scmp.ne.s32.totalorder %s2587_s28, %s2184_s18  ;;  %p2190_p1 = scmp.lt.s32.totalorder %s2184_s18, %s2184_s18 }
  0x43   :  { %p2191_p2 = por %p2190_p1, %p2189_p0 }
  0x45   :  { %p2192_p3 = pnand %p2191_p2, %p2185_p13 }
  0x47   :  { %2195 = shalt.err (!%p2192_p3)
}
  0x48   :  { %123 = dma.hbm_to_vmem [thread:$0]  %s2928_s7, 256, %s2587_s28, [#allocation15], %s2458_s25, %s2458_s25, %s2459_s26  }
  0x49   :  { %s2462_s19 = smov [#allocation17]   ;;  %s2463_s21 = smov [#allocation20]  }
  0x4a   :  { %s141_s20 = sshll.u32 %s2462_s19, 4  ;;  %s164_s3 = sshll.u32 %s2463_s21, 4  ;;  %s142_s20 = int_to_ptr.vmem [resolvable:$true] %s141_s20  ;;  %s165_s3 = int_to_ptr.vmem [resolvable:$true] %s164_s3 }
  0x4b   :  { %s2196_s1 = scalar_lea.hbm %s2930_s9, 512 }
  0x4c   :  { %p2197_p4 = scmp.ne.s32.totalorder %s2930_s9, %s2196_s1  ;;  %p2200_p5 = scmp.lt.u32.totalorder %s2196_s1, %s2930_s9 }
  0x4e   :  { %p2202_p6 = pnand %p2200_p5, %p2197_p4 }
  0x50   :  { %2205 = shalt.err (!%p2202_p6)
}
  0x51   :  { %s2206_s7 = scalar_lea.vmem %s142_s20, 512  ;;  %p2211_p8 = scmp.lt.s32.totalorder %s142_s20, %s142_s20 }
  0x52   :  { %p2207_p7 = scmp.ne.s32.totalorder %s142_s20, %s2206_s7  ;;  %p2212_p9 = scmp.lt.s32.totalorder %s2206_s7, %s2206_s7 }
  0x54   :  { %p2213_p10 = por %p2212_p9, %p2211_p8 }
  0x56   :  { %p2214_p11 = pnand %p2213_p10, %p2207_p7 }
  0x58   :  { %2217 = shalt.err (!%p2214_p11)
}
  0x59   :  { %147 = dma.hbm_to_vmem [thread:$0]  %s2930_s9, 512, %s142_s20, [#allocation18], %s2458_s25, %s2458_s25, %s2459_s26  }
  0x5a   :  { %s2218_s5 = scalar_lea.hbm %s2932_s11, 16 }
  0x5b   :  { %p2219_p12 = scmp.ne.s32.totalorder %s2932_s11, %s2218_s5  ;;  %p2222_p13 = scmp.lt.u32.totalorder %s2218_s5, %s2932_s11 }
  0x5d   :  { %p2224_p0 = pnand %p2222_p13, %p2219_p12 }
  0x5f   :  { %2227 = shalt.err (!%p2224_p0)
}
  0x60   :  { %s2228_s22 = scalar_lea.vmem %s165_s3, 16  ;;  %s2232_s1 = scalar_lea.vmem %s165_s3, 32 }
  0x61   :  { %p2229_p1 = scmp.ne.s32.totalorder %s165_s3, %s2228_s22  ;;  %p2233_p2 = scmp.lt.s32.totalorder %s165_s3, %s165_s3 }
  0x62   :  { %p2234_p3 = scmp.lt.s32.totalorder %s2232_s1, %s2228_s22 }
  0x64   :  { %p2235_p4 = por %p2234_p3, %p2233_p2 }
  0x66   :  { %p2236_p5 = pnand %p2235_p4, %p2229_p1 }
  0x68   :  { %2239 = shalt.err (!%p2236_p5)
}
  0x69   :  { %167 = dma.hbm_to_vmem [thread:$0]  %s2932_s11, 16, %s165_s3, [#allocation21]  }
  0x6a   :  { %s2464_s30 = smov [#allocation2]   ;;  %s2465_s27 = smov [#allocation7]  }
  0x6b   :  { %s33_s23 = sshll.u32 %s2464_s30, 4  ;;  %s57_s29 = sshll.u32 %s2465_s27, 4  ;;  %s34_s23 = int_to_ptr.vmem [resolvable:$true] %s33_s23  ;;  %s2651_s29 = int_to_ptr.vmem [resolvable:$true] %s57_s29 }
  0x6c   :  { %s2240_s15 = scalar_lea.hbm %s2921_s0, 960 }
  0x6d   :  { %p2241_p6 = scmp.ne.s32.totalorder %s2921_s0, %s2240_s15  ;;  %p2244_p7 = scmp.lt.u32.totalorder %s2240_s15, %s2921_s0 }
  0x6f   :  { %p2246_p8 = pnand %p2244_p7, %p2241_p6 }
  0x71   :  { %2249 = shalt.err (!%p2246_p8)
}
  0x72   :  { %s2250_s11 = scalar_lea.vmem %s34_s23, 960  ;;  %p2255_p10 = scmp.lt.s32.totalorder %s34_s23, %s34_s23 }
  0x73   :  { %p2251_p9 = scmp.ne.s32.totalorder %s34_s23, %s2250_s11  ;;  %p2256_p11 = scmp.lt.s32.totalorder %s2250_s11, %s2250_s11 }
  0x75   :  { %p2257_p12 = por %p2256_p11, %p2255_p10 }
  0x77   :  { %p2258_p13 = pnand %p2257_p12, %p2251_p9 }
  0x79   :  { %2261 = shalt.err (!%p2258_p13)
}
  0x7a   :  { %39 = dma.hbm_to_vmem [thread:$0]  %s2921_s0, 960, %s34_s23, [#allocation3], %s2458_s25, %s2458_s25, %s2459_s26  }
  0x7b   :  { %s2262_s22 = scalar_lea.hbm %s2923_s2, 768 }
  0x7c   :  { %p2263_p0 = scmp.ne.s32.totalorder %s2923_s2, %s2262_s22  ;;  %p2266_p1 = scmp.lt.u32.totalorder %s2262_s22, %s2923_s2 }
  0x7e   :  { %p2268_p2 = pnand %p2266_p1, %p2263_p0 }
  0x80   :  { %2271 = shalt.err (!%p2268_p2)
}
  0x81   :  { %s2272_s27 = scalar_lea.vmem %s2651_s29, 768  ;;  %p2277_p4 = scmp.lt.s32.totalorder %s2651_s29, %s2651_s29 }
  0x82   :  { %p2273_p3 = scmp.ne.s32.totalorder %s2651_s29, %s2272_s27  ;;  %p2278_p5 = scmp.lt.s32.totalorder %s2272_s27, %s2272_s27 }
  0x84   :  { %p2279_p6 = por %p2278_p5, %p2277_p4 }
  0x86   :  { %p2280_p7 = pnand %p2279_p6, %p2273_p3 }
  0x88   :  { %2283 = shalt.err (!%p2280_p7)
}
  0x89   :  { %63 = dma.hbm_to_vmem [thread:$0]  %s2923_s2, 768, %s2651_s29, [#allocation6], %s2458_s25, %s2458_s25, %s2459_s26  }
  0x8a   :  { %s2466_s7 = smov [#allocation10]   ;;  %s2467_s15 = smov [#allocation13]  }
  0x8b   :  { %s81_s28 = sshll.u32 %s2466_s7, 4  ;;  %s105_s17 = sshll.u32 %s2467_s15, 4  ;;  %s82_s28 = int_to_ptr.vmem [resolvable:$true] %s81_s28  ;;  %s2688_s17 = int_to_ptr.vmem [resolvable:$true] %s105_s17 }
  0x8c   :  { %s2284_s24 = scalar_lea.hbm %s2925_s4, 256 }
  0x8d   :  { %p2285_p8 = scmp.ne.s32.totalorder %s2925_s4, %s2284_s24  ;;  %p2288_p9 = scmp.lt.u32.totalorder %s2284_s24, %s2925_s4 }
  0x8f   :  { %p2290_p10 = pnand %p2288_p9, %p2285_p8 }
  0x91   :  { %2293 = shalt.err (!%p2290_p10)
}
  0x92   :  { %s2294_s2 = scalar_lea.vmem %s82_s28, 256  ;;  %p2299_p12 = scmp.lt.s32.totalorder %s82_s28, %s82_s28 }
  0x93   :  { %p2295_p11 = scmp.ne.s32.totalorder %s82_s28, %s2294_s2  ;;  %p2300_p13 = scmp.lt.s32.totalorder %s2294_s2, %s2294_s2 }
  0x95   :  { %p2301_p0 = por %p2300_p13, %p2299_p12 }
  0x97   :  { %p2302_p1 = pnand %p2301_p0, %p2295_p11 }
  0x99   :  { %2305 = shalt.err (!%p2302_p1)
}
  0x9a   :  { %87 = dma.hbm_to_vmem [thread:$0]  %s2925_s4, 256, %s82_s28, [#allocation9], %s2458_s25, %s2458_s25, %s2459_s26  }
  0x9b   :  { %s2306_s9 = scalar_lea.hbm %s2927_s6, 256 }
  0x9c   :  { %p2307_p2 = scmp.ne.s32.totalorder %s2927_s6, %s2306_s9  ;;  %p2310_p3 = scmp.lt.u32.totalorder %s2306_s9, %s2927_s6 }
  0x9e   :  { %p2312_p4 = pnand %p2310_p3, %p2307_p2 }
  0xa0   :  { %2315 = shalt.err (!%p2312_p4)
}
  0xa1   :  { %s2316_s23 = scalar_lea.vmem %s2688_s17, 256  ;;  %p2321_p6 = scmp.lt.s32.totalorder %s2688_s17, %s2688_s17 }
  0xa2   :  { %p2317_p5 = scmp.ne.s32.totalorder %s2688_s17, %s2316_s23  ;;  %p2322_p7 = scmp.lt.s32.totalorder %s2316_s23, %s2316_s23 }
  0xa4   :  { %p2323_p8 = por %p2322_p7, %p2321_p6 }
  0xa6   :  { %p2324_p9 = pnand %p2323_p8, %p2317_p5 }
  0xa8   :  { %2327 = shalt.err (!%p2324_p9)
}
  0xa9   :  { %111 = dma.hbm_to_vmem [thread:$0]  %s2927_s6, 256, %s2688_s17, [#allocation12], %s2458_s25, %s2458_s25, %s2459_s26  }
  0xaa   :  { %s2468_s28 = smov [#allocation16]   ;;  %s2469_s18 = smov [#allocation19]  }
  0xab   :  { %s129_s15 = sshll.u32 %s2468_s28, 4  ;;  %s154_s5 = sshll.u32 %s2469_s18, 4  ;;  %s130_s15 = int_to_ptr.vmem [resolvable:$true] %s129_s15  ;;  %s155_s5 = int_to_ptr.vmem [resolvable:$true] %s154_s5 }
  0xac   :  { %s2328_s3 = scalar_lea.hbm %s2929_s8, 256 }
  0xad   :  { %p2329_p10 = scmp.ne.s32.totalorder %s2929_s8, %s2328_s3  ;;  %p2332_p11 = scmp.lt.u32.totalorder %s2328_s3, %s2929_s8 }
  0xaf   :  { %p2334_p12 = pnand %p2332_p11, %p2329_p10 }
  0xb1   :  { %2337 = shalt.err (!%p2334_p12)
}
  0xb2   :  { %s2338_s6 = scalar_lea.vmem %s130_s15, 256  ;;  %p2343_p0 = scmp.lt.s32.totalorder %s130_s15, %s130_s15 }
  0xb3   :  { %p2339_p13 = scmp.ne.s32.totalorder %s130_s15, %s2338_s6  ;;  %p2344_p1 = scmp.lt.s32.totalorder %s2338_s6, %s2338_s6 }
  0xb5   :  { %p2345_p2 = por %p2344_p1, %p2343_p0 }
  0xb7   :  { %p2346_p3 = pnand %p2345_p2, %p2339_p13 }
  0xb9   :  { %2349 = shalt.err (!%p2346_p3)
}
  0xba   :  { %135 = dma.hbm_to_vmem [thread:$0]  %s2929_s8, 256, %s130_s15, [#allocation15], %s2458_s25, %s2458_s25, %s2459_s26  }
  0xbb   :  { %s2350_s9 = scalar_lea.hbm %s2931_s10, 16 }
  0xbc   :  { %p2351_p4 = scmp.ne.s32.totalorder %s2931_s10, %s2350_s9  ;;  %p2354_p5 = scmp.lt.u32.totalorder %s2350_s9, %s2931_s10 }
  0xbe   :  { %p2356_p6 = pnand %p2354_p5, %p2351_p4 }
  0xc0   :  { %2359 = shalt.err (!%p2356_p6)
}
  0xc1   :  { %s2360_s23 = scalar_lea.vmem %s155_s5, 16  ;;  %s2364_s4 = scalar_lea.vmem %s155_s5, 32 }
  0xc2   :  { %p2361_p7 = scmp.ne.s32.totalorder %s155_s5, %s2360_s23  ;;  %p2365_p8 = scmp.lt.s32.totalorder %s155_s5, %s155_s5 }
  0xc3   :  { %p2366_p9 = scmp.lt.s32.totalorder %s2364_s4, %s2360_s23 }
  0xc5   :  { %p2367_p10 = por %p2366_p9, %p2365_p8 }
  0xc7   :  { %p2368_p11 = pnand %p2367_p10, %p2361_p7 }
  0xc9   :  { %2371 = shalt.err (!%p2368_p11)
}
  0xca   :  { %157 = dma.hbm_to_vmem [thread:$0]  %s2931_s10, 16, %s155_s5, [#allocation18]  }
  0xcb   :  { %s2470_s26 = smov [#allocation22]   ;;  %s2471_s28 = smov [#allocation23]  }
  0xcc   :  { %s174_s7 = sshll.u32 %s2470_s26, 4  ;;  %s184_s15 = sshll.u32 %s2471_s28, 4  ;;  %s175_s7 = int_to_ptr.vmem [resolvable:$true] %s174_s7  ;;  %s185_s15 = int_to_ptr.vmem [resolvable:$true] %s184_s15 }
  0xcd   :  { %s2372_s11 = scalar_lea.hbm %s2933_s12, 16 }
  0xce   :  { %p2373_p12 = scmp.ne.s32.totalorder %s2933_s12, %s2372_s11  ;;  %p2376_p13 = scmp.lt.u32.totalorder %s2372_s11, %s2933_s12 }
  0xd0   :  { %p2378_p0 = pnand %p2376_p13, %p2373_p12 }
  0xd2   :  { %2381 = shalt.err (!%p2378_p0)
}
  0xd3   :  { %s2382_s10 = scalar_lea.vmem %s175_s7, 16  ;;  %s2386_s5 = scalar_lea.vmem %s175_s7, 32 }
  0xd4   :  { %p2383_p1 = scmp.ne.s32.totalorder %s175_s7, %s2382_s10  ;;  %p2387_p2 = scmp.lt.s32.totalorder %s175_s7, %s175_s7 }
  0xd5   :  { %p2388_p3 = scmp.lt.s32.totalorder %s2386_s5, %s2382_s10 }
  0xd7   :  { %p2389_p4 = por %p2388_p3, %p2387_p2 }
  0xd9   :  { %p2390_p5 = pnand %p2389_p4, %p2383_p1 }
  0xdb   :  { %2393 = shalt.err (!%p2390_p5)
}
  0xdc   :  { %177 = dma.hbm_to_vmem [thread:$0]  %s2933_s12, 16, %s175_s7, [#allocation21]  }
  0xdd   :  { %s2394_s22 = scalar_lea.hbm %s2934_s13, 16 }
  0xde   :  { %p2395_p6 = scmp.ne.s32.totalorder %s2934_s13, %s2394_s22  ;;  %p2398_p7 = scmp.lt.u32.totalorder %s2394_s22, %s2934_s13 }
  0xe0   :  { %p2400_p8 = pnand %p2398_p7, %p2395_p6 }
  0xe2   :  { %2403 = shalt.err (!%p2400_p8)
}
  0xe3   :  { %s2404_s27 = scalar_lea.vmem %s185_s15, 16  ;;  %s2408_s0 = scalar_lea.vmem %s185_s15, 32 }
  0xe4   :  { %p2405_p9 = scmp.ne.s32.totalorder %s185_s15, %s2404_s27  ;;  %p2409_p10 = scmp.lt.s32.totalorder %s185_s15, %s185_s15 }
  0xe5   :  { %p2410_p11 = scmp.lt.s32.totalorder %s2408_s0, %s2404_s27 }
  0xe7   :  { %p2411_p12 = por %p2410_p11, %p2409_p10 }
  0xe9   :  { %p2412_p13 = pnand %p2411_p12, %p2405_p9 }
  0xeb   :  { %2415 = shalt.err (!%p2412_p13)
}
  0xec   :  { %187 = dma.hbm_to_vmem [thread:$0]  %s2934_s13, 16, %s185_s15, [#allocation24]  }
  0xed   :  { %2438 = dma.done.wait [#allocation3], 960  }
  0xee   :  { %2439 = vsyncadd [#allocation3], 4294966336 }
  0xef   :  { %2440 = dma.done.wait [#allocation6], 1728  }
  0xf0   :  { %2441 = vsyncadd [#allocation6], 4294965568 }
  0xf1   :  { %2442 = dma.done.wait [#allocation9], 1024  }
  0xf2   :  { %2443 = vsyncadd [#allocation9], 4294966272 }
  0xf3   :  { %2444 = dma.done.wait [#allocation12], 512  }
  0xf4   :  { %2445 = vsyncadd [#allocation12], 4294966784 }
  0xf5   :  { %2446 = dma.done.wait [#allocation15], 512  }
  0xf6   :  { %2447 = vsyncadd [#allocation15], 4294966784 }
  0xf7   :  { %2448 = dma.done.wait [#allocation18], 528  }
  0xf8   :  { %2449 = vsyncadd [#allocation18], 4294966768 }
  0xf9   :  { %2450 = dma.done.wait [#allocation21], 32  }
  0xfa   :  { %2451 = vsyncadd [#allocation21], 4294967264 }
  0xfb   :  { %2452 = dma.done.wait [#allocation24], 16  }
  0xfc   :  { %2453 = vsyncadd [#allocation24], 4294967280  ;;  %v2066_v0 = vld [vmem:[#allocation10] sm:$0xff]   ;;  %v2067_v1 = vld [vmem:[#allocation11] sm:$0xff]   ;;  %vm307_vm0 = vcmask 261120   ;;  %vm712_vm1 = vcmask 982016  }
  0xfd   :  { %1828 = vmatprep.subr.bf16.mxu0 %v2066_v0  ;;  %v2068_v2 = vld [vmem:[#allocation10 + $0x8] sm:$0xff]   ;;  %1848 = vmatprep.subr.bf16.mxu1 %v2067_v1  ;;  %v2069_v3 = vld [vmem:[#allocation11 + $0x8] sm:$0xff]   ;;  %v2072_v6 = vld [vmem:[#allocation2 + $0x8] sm:$0xff]   ;;  %vm731_vm2 = vcmask 1043456   ;;  %vm1492_vm3 = vcmask 523264   ;;  %s2472_s13 = smov [#allocation25]  }
  0xfe   :  { %1829 = vmatpush3.bf16.msra.mxu0 %v2066_v0  ;;  %1849 = vmatpush3.bf16.msra.mxu1 %v2067_v1  ;;  %v2070_v4 = vld [vmem:[#allocation2] sm:$0xff]   ;;  %v2074_v8 = vld [vmem:[#allocation2 + $0x10] sm:$0xff]   ;;  %v2076_v10 = vld [vmem:[#allocation2 + $0x18] sm:$0xff]   ;;  %s1609_s4 = sshll.u32 %s2472_s13, 4  ;;  %s1610_s4 = int_to_ptr.vmem [resolvable:$true] %s1609_s4 }
  0xff   :  { %1830 = vmatprep.subr.bf16.mxu0 %v2068_v2  ;;  %1850 = vmatprep.subr.bf16.mxu1 %v2069_v3  ;;  %v2071_v5 = vld [vmem:[#allocation5] sm:$0xff]   ;;  %v2073_v7 = vld [vmem:[#allocation5 + $0x8] sm:$0xff]   ;;  %v2075_v9 = vld [vmem:[#allocation5 + $0x10] sm:$0xff]   ;;  %s2416_s8 = scalar_lea.vmem %s1610_s4, 1536  ;;  %p2421_p1 = scmp.lt.s32.totalorder %s1610_s4, %s1610_s4 }
 0x100   :  { %1832 = vmatprep.mubr.msk.bf16.mxu0 %vm307_vm0, %v2070_v4  ;;  %1852 = vmatprep.mubr.msk.bf16.mxu1 %vm307_vm0, %v2071_v5  ;;  %v2077_v11 = vld [vmem:[#allocation5 + $0x18] sm:$0xff]   ;;  %v2078_v12 = vld [vmem:[#allocation2 + $0x20] sm:$0xff]   ;;  %v2080_v14 = vld [vmem:[#allocation2 + $0x28] sm:$0xff]   ;;  %p2417_p0 = scmp.ne.s32.totalorder %s1610_s4, %s2416_s8  ;;  %p2422_p2 = scmp.lt.s32.totalorder %s2416_s8, %s2416_s8 }
 0x101   :  { %v2079_v13 = vld [vmem:[#allocation5 + $0x20] sm:$0xff]   ;;  %v2081_v15 = vld [vmem:[#allocation5 + $0x28] sm:$0xff]   ;;  %v2082_v16 = vld [vmem:[#allocation2 + $0x30] sm:$0xff]  }
 0x102   :  { %1831 = vmatpush3.bf16.msra.mxu0 %v2068_v2  ;;  %1851 = vmatpush3.bf16.msra.mxu1 %v2069_v3  ;;  %v2083_v17 = vld [vmem:[#allocation5 + $0x30] sm:$0xff]   ;;  %v2084_v18 = vld [vmem:[#allocation2 + $0x38] ss:$0 sps:$4 sm:$0xff]   ;;  %v2085_v19 = vld [vmem:[#allocation5 + $0x38] ss:$0 sps:$4 sm:$0xff]   ;;  %p2423_p3 = por %p2422_p2, %p2421_p1 }
 0x103   :  { %v2086_v20 = vld [vmem:[#allocation7] sm:$0xff]   ;;  %v2794_v21 = vld [vmem:[#allocation19] ss:$0 sm:$0xff]  ;;  %v2796_v22 = vld [vmem:[#allocation20] ss:$0 sm:$0xff] }
 0x104   :  { %p2424_p4 = pnand %p2423_p3, %p2417_p0 }
 0x105   :  { %1833 = vmatmul.mubr.msk.bf16.vlgmr.msra.gmra.mrb[0].mxu0 %vm307_vm0, %v2072_v6  ;;  %1853 = vmatmul.mubr.msk.bf16.vlgmr.msra.gmra.mrb[0].mxu1 %vm307_vm0, %v2073_v7 }
 0x106   :  { %1836 = vmatprep.mubr.msk.bf16.mxu0 %vm307_vm0, %v2074_v8  ;;  %1856 = vmatprep.mubr.msk.bf16.mxu1 %vm307_vm0, %v2075_v9 }
 0x10d   :  { %1837 = vmatmul.mubr.msk.bf16.gmra.mrb[4].mxu0 %vm307_vm0, %v2076_v10  ;;  %1857 = vmatmul.mubr.msk.bf16.gmra.mrb[4].mxu1 %vm307_vm0, %v2077_v11 }
 0x10e   :  { %1840 = vmatprep.mubr.msk.bf16.mxu0 %vm307_vm0, %v2078_v12  ;;  %1860 = vmatprep.mubr.msk.bf16.mxu1 %vm307_vm0, %v2079_v13 }
 0x115   :  { %1841 = vmatmul.mubr.msk.bf16.gmra.mrb[8].mxu0 %vm307_vm0, %v2080_v14  ;;  %1861 = vmatmul.mubr.msk.bf16.gmra.mrb[8].mxu1 %vm307_vm0, %v2081_v15 }
 0x116   :  { %1844 = vmatprep.mubr.msk.bf16.mxu0 %vm307_vm0, %v2082_v16  ;;  %1864 = vmatprep.mubr.msk.bf16.mxu1 %vm307_vm0, %v2083_v17 }
 0x11d   :  { %1845 = vmatmul.mubr.msk.bf16.gmra.mrb[12].mxu0 %vm307_vm0, %v2084_v18  ;;  %1865 = vmatmul.mubr.msk.bf16.gmra.mrb[12].mxu1 %vm307_vm0, %v2085_v19 }
 0x11e   :  { %1912 = vmatprep.mubr.msk.bf16.mxu1 %vm712_vm1, %v2086_v20  ;;  %1884 = vmatprep.mubr.msk.bf16.mxu0 %vm712_vm1, %v2086_v20 }
 0x1d8   :  { %v1834_v23 = vpop.f32.mrb[0].mxu0  ;;  %v1854_v25 = vpop.f32.mrb[0].mxu1 }
 0x1d9   :  { %v375_v24 = vadd.f32 %v1834_v23, %v2794_v21  ;;  %v366_v26 = vpop.f32.mrb[1].mxu0  ;;  %v586_v27 = vadd.f32 %v1854_v25, %v2796_v22  ;;  %v577_v29 = vpop.f32.mrb[1].mxu1 }
 0x1da   :  { %v367_v28 = vadd.f32 %v2794_v21, %v366_v26  ;;  %v1835_v30 = vpop.f32.mrb[2].mxu0  ;;  %v578_v32 = vadd.f32 %v2796_v22, %v577_v29  ;;  %v1855_v34 = vpop.f32.mrb[2].mxu1 }
 0x1db   :  { %v430_v31 = vmax.f32 %v375_v24, 0.0  ;;  %v378_v33 = vadd.f32 %v1835_v30, %v2794_v21  ;;  %v369_v35 = vpop.f32.mrb[3].mxu0  ;;  %v589_v37 = vadd.f32 %v1855_v34, %v2796_v22  ;;  %v580_v39 = vpop.f32.mrb[3].mxu1  ;;  %v641_v42 = vmax.f32 %v586_v27, 0.0 }
 0x1dc   :  { %v428_v36 = vmax.f32 %v367_v28, 0.0  ;;  %v370_v38 = vadd.f32 %v2794_v21, %v369_v35  ;;  %v581_v41 = vadd.f32 %v2796_v22, %v580_v39  ;;  %v639_v45 = vmax.f32 %v578_v32, 0.0 }
 0x1dd   :  { %v431_v40 = vmax.f32 %v378_v33, 0.0  ;;  %v642_v43 = vmax.f32 %v589_v37, 0.0 }
 0x1de   :  { %v429_v44 = vmax.f32 %v370_v38, 0.0  ;;  %v640_v47 = vmax.f32 %v581_v41, 0.0 }
 0x1df   :  { %v2806_v46 = vpack.c.bf16 %v431_v40, %v430_v31  ;;  %v663_v48 = vpack.c.bf16 %v642_v43, %v641_v42 }
 0x1e0   :  { %v2808_v49 = vpack.c.bf16 %v429_v44, %v428_v36  ;;  %v1838_v50 = vpop.f32.mrb[4].mxu0  ;;  %v662_v51 = vpack.c.bf16 %v640_v47, %v639_v45  ;;  %v1858_v53 = vpop.f32.mrb[4].mxu1 }
 0x1e1   :  { %v391_v52 = vadd.f32 %v1838_v50, %v2794_v21  ;;  %v382_v54 = vpop.f32.mrb[5].mxu0  ;;  %v602_v55 = vadd.f32 %v1858_v53, %v2796_v22  ;;  %v593_v57 = vpop.f32.mrb[5].mxu1 }
 0x1e2   :  { %v383_v56 = vadd.f32 %v2794_v21, %v382_v54  ;;  %v1839_v58 = vpop.f32.mrb[6].mxu0  ;;  %1868 = vmatprep.subr.bf16.mxu0 %v2808_v49  ;;  %v594_v60 = vadd.f32 %v2796_v22, %v593_v57  ;;  %v1859_v62 = vpop.f32.mrb[6].mxu1  ;;  %1896 = vmatprep.subr.bf16.mxu1 %v662_v51 }
 0x1e3   :  { %v434_v59 = vmax.f32 %v391_v52, 0.0  ;;  %v394_v61 = vadd.f32 %v1839_v58, %v2794_v21  ;;  %v385_v63 = vpop.f32.mrb[7].mxu0  ;;  %1869 = vmatpush3.bf16.msra.mxu0 %v2808_v49  ;;  %v605_v1 = vadd.f32 %v1859_v62, %v2796_v22  ;;  %v596_v3 = vpop.f32.mrb[7].mxu1  ;;  %1897 = vmatpush3.bf16.msra.mxu1 %v662_v51  ;;  %v645_v6 = vmax.f32 %v602_v55, 0.0 }
 0x1e4   :  { %v432_v0 = vmax.f32 %v383_v56, 0.0  ;;  %v386_v2 = vadd.f32 %v2794_v21, %v385_v63  ;;  %1870 = vmatprep.subr.bf16.mxu0 %v2806_v46  ;;  %v597_v5 = vadd.f32 %v2796_v22, %v596_v3  ;;  %1898 = vmatprep.subr.bf16.mxu1 %v663_v48  ;;  %v643_v9 = vmax.f32 %v594_v60, 0.0 }
 0x1e5   :  { %v435_v4 = vmax.f32 %v394_v61, 0.0  ;;  %v646_v7 = vmax.f32 %v605_v1, 0.0 }
 0x1e6   :  { %v433_v8 = vmax.f32 %v386_v2, 0.0  ;;  %v644_v11 = vmax.f32 %v597_v5, 0.0 }
 0x1e7   :  { %v2821_v10 = vpack.c.bf16 %v435_v4, %v434_v59  ;;  %1871 = vmatpush3.bf16.msra.mxu0 %v2806_v46  ;;  %v665_v12 = vpack.c.bf16 %v646_v7, %v645_v6  ;;  %1899 = vmatpush3.bf16.msra.mxu1 %v663_v48  ;;  %v2087_v7 = vld [vmem:[#allocation7 + $0x8] sm:$0xff]  }
 0x1e8   :  { %v2824_v13 = vpack.c.bf16 %v433_v8, %v432_v0  ;;  %v1842_v14 = vpop.f32.mrb[8].mxu0  ;;  %v664_v15 = vpack.c.bf16 %v644_v11, %v643_v9  ;;  %v1862_v17 = vpop.f32.mrb[8].mxu1  ;;  %v2088_v9 = vld [vmem:[#allocation7 + $0x10] sm:$0xff]   ;;  %v2099_v11 = vld [vmem:[#allocation14 + $0x8] sm:$0xff]  }
 0x1e9   :  { %v407_v16 = vadd.f32 %v1842_v14, %v2794_v21  ;;  %v398_v18 = vpop.f32.mrb[9].mxu0  ;;  %v618_v19 = vadd.f32 %v1862_v17, %v2796_v22  ;;  %v609_v23 = vpop.f32.mrb[9].mxu1  ;;  %v2090_v14 = vld [vmem:[#allocation7 + $0x20] sm:$0xff]   ;;  %v2097_v17 = vld [vmem:[#allocation8 + $0x28] sm:$0xff]  }
 0x1ea   :  { %v399_v20 = vadd.f32 %v2794_v21, %v398_v18  ;;  %v1843_v24 = vpop.f32.mrb[10].mxu0  ;;  %1872 = vmatprep.subr.bf16.mxu0 %v2824_v13  ;;  %v610_v26 = vadd.f32 %v2796_v22, %v609_v23  ;;  %v1863_v28 = vpop.f32.mrb[10].mxu1  ;;  %1900 = vmatprep.subr.bf16.mxu1 %v664_v15  ;;  %v2100_v18 = vld [vmem:[#allocation13] sm:$0xff]  }
 0x1eb   :  { %v438_v25 = vmax.f32 %v407_v16, 0.0  ;;  %v410_v27 = vadd.f32 %v1843_v24, %v2794_v21  ;;  %v401_v29 = vpop.f32.mrb[11].mxu0  ;;  %1873 = vmatpush3.bf16.msra.mxu0 %v2824_v13  ;;  %v621_v31 = vadd.f32 %v1863_v28, %v2796_v22  ;;  %v612_v33 = vpop.f32.mrb[11].mxu1  ;;  %1901 = vmatpush3.bf16.msra.mxu1 %v664_v15  ;;  %v649_v36 = vmax.f32 %v618_v19, 0.0  ;;  %v2095_v15 = vld [vmem:[#allocation8 + $0x18] sm:$0xff]   ;;  %v2096_v16 = vld [vmem:[#allocation8 + $0x20] sm:$0xff]  }
 0x1ec   :  { %v436_v30 = vmax.f32 %v399_v20, 0.0  ;;  %v402_v32 = vadd.f32 %v2794_v21, %v401_v29  ;;  %1874 = vmatprep.subr.bf16.mxu0 %v2821_v10  ;;  %v613_v35 = vadd.f32 %v2796_v22, %v612_v33  ;;  %1902 = vmatprep.subr.bf16.mxu1 %v665_v12  ;;  %v647_v39 = vmax.f32 %v610_v26, 0.0  ;;  %v2104_v19 = vld [vmem:[#allocation17] sm:$0xff]   ;;  %v2105_v20 = vld [vmem:[#allocation17 + $0x8] sm:$0xff]   ;;  %v2106_v23 = vld [vmem:[#allocation17 + $0x10] sm:$0xff]  }
 0x1ed   :  { %v439_v34 = vmax.f32 %v410_v27, 0.0  ;;  %v650_v37 = vmax.f32 %v621_v31, 0.0 }
 0x1ee   :  { %v437_v38 = vmax.f32 %v402_v32, 0.0  ;;  %v648_v41 = vmax.f32 %v613_v35, 0.0 }
 0x1ef   :  { %v2837_v40 = vpack.c.bf16 %v439_v34, %v438_v25  ;;  %1875 = vmatpush3.bf16.msra.mxu0 %v2821_v10  ;;  %v667_v42 = vpack.c.bf16 %v650_v37, %v649_v36  ;;  %1903 = vmatpush3.bf16.msra.mxu1 %v665_v12  ;;  %v2089_v12 = vld [vmem:[#allocation7 + $0x18] sm:$0xff]   ;;  %v2101_v36 = vld [vmem:[#allocation13 + $0x8] sm:$0xff]  }
 0x1f0   :  { %v2840_v43 = vpack.c.bf16 %v437_v38, %v436_v30  ;;  %v1846_v44 = vpop.f32.mrb[12].mxu0  ;;  %v666_v45 = vpack.c.bf16 %v648_v41, %v647_v39  ;;  %v1866_v48 = vpop.f32.mrb[12].mxu1  ;;  %v2102_v41 = vld [vmem:[#allocation16] sm:$0xff]  }
 0x1f1   :  { %v423_v47 = vadd.f32 %v1846_v44, %v2794_v21  ;;  %v414_v50 = vpop.f32.mrb[13].mxu0  ;;  %v625_v52 = vpop.f32.mrb[13].mxu1  ;;  %v634_v54 = vadd.f32 %v1866_v48, %v2796_v22 }
 0x1f2   :  { %v415_v51 = vadd.f32 %v2794_v21, %v414_v50  ;;  %v1847_v53 = vpop.f32.mrb[14].mxu0  ;;  %1876 = vmatprep.subr.bf16.mxu0 %v2840_v43  ;;  %v626_v55 = vadd.f32 %v2796_v22, %v625_v52  ;;  %v1867_v56 = vpop.f32.mrb[14].mxu1  ;;  %1904 = vmatprep.subr.bf16.mxu1 %v666_v45 }
 0x1f3   :  { %v417_v57 = vpop.f32.mrb[15].mxu0  ;;  %1877 = vmatpush3.bf16.msra.mxu0 %v2840_v43  ;;  %v442_v58 = vmax.f32 %v423_v47, 0.0  ;;  %v628_v61 = vpop.f32.mrb[15].mxu1  ;;  %1905 = vmatpush3.bf16.msra.mxu1 %v666_v45  ;;  %v653_v0 = vmax.f32 %v634_v54, 0.0 }
 0x1f4   :  { %v440_v59 = vmax.f32 %v415_v51, 0.0  ;;  %v418_v60 = vadd.f32 %v2794_v21, %v417_v57  ;;  %1878 = vmatprep.subr.bf16.mxu0 %v2837_v40  ;;  %v629_v62 = vadd.f32 %v2796_v22, %v628_v61  ;;  %1906 = vmatprep.subr.bf16.mxu1 %v667_v42  ;;  %v651_v1 = vmax.f32 %v626_v55, 0.0  ;;  %v2098_v22 = vld [vmem:[#allocation14] sm:$0xff]  }
 0x1f5   :  { %v661_v3 = vpack.c.bf16 %v442_v58, %v442_v58  ;;  %v669_v6 = vpack.c.bf16 %v653_v0, %v653_v0  ;;  %v2103_v0 = vld [vmem:[#allocation16 + $0x8] sm:$0xff]  }
 0x1f6   :  { %v441_v63 = vmax.f32 %v418_v60, 0.0  ;;  %v652_v2 = vmax.f32 %v629_v62, 0.0 }
 0x1f7   :  { %1879 = vmatpush3.bf16.msra.mxu0 %v2837_v40  ;;  %1907 = vmatpush3.bf16.msra.mxu1 %v667_v42  ;;  %v733_v21 = vsel %vm731_vm2, %v661_v3, 0  ;;  %v817_v8 = vsel %vm731_vm2, %v669_v6, 0 }
 0x1f8   :  { %v660_v4 = vpack.c.bf16 %v441_v63, %v440_v59  ;;  %v668_v5 = vpack.c.bf16 %v652_v2, %v651_v1 }
 0x1fa   :  { %1880 = vmatprep.subr.bf16.mxu0 %v660_v4  ;;  %1908 = vmatprep.subr.bf16.mxu1 %v668_v5 }
 0x1fb   :  { %1881 = vmatpush3.bf16.msra.mxu0 %v660_v4  ;;  %1909 = vmatpush3.bf16.msra.mxu1 %v668_v5 }
 0x1fc   :  { %2044 = vmatprep.subr.msk.bf16.mxu0 %vm731_vm2, %v661_v3  ;;  %2045 = vmatprep.subr.msk.bf16.mxu1 %vm731_vm2, %v669_v6 }
 0x1ff   :  { %1883 = vmatpush3.bf16.msra.mxu0 %v733_v21  ;;  %1911 = vmatpush3.bf16.msra.mxu1 %v817_v8 }
 0x200   :  { %1924 = vmatprep.subr.bf16.mxu0 %v2808_v49  ;;  %1952 = vmatprep.subr.bf16.mxu1 %v2098_v22 }
 0x202   :  { %1885 = vmatmul.mubr.msk.bf16.vlgmr.msra.gmra.mrb[16].mxu0 %vm712_vm1, %v2087_v7  ;;  %1913 = vmatmul.mubr.msk.bf16.vlgmr.msra.gmra.mrb[16].mxu1 %vm712_vm1, %v2087_v7 }
 0x203   :  { %1925 = vmatpush3.bf16.msra.mxu0 %v2808_v49  ;;  %1916 = vmatprep.mubr.msk.bf16.mxu1 %vm712_vm1, %v2088_v9  ;;  %v2092_v49 = vld [vmem:[#allocation8] sm:$0xff]  }
 0x204   :  { %1926 = vmatprep.subr.bf16.mxu0 %v2806_v46  ;;  %1888 = vmatprep.mubr.msk.bf16.mxu0 %vm712_vm1, %v2088_v9 }
 0x205   :  { %1953 = vmatpush3.bf16.msra.mxu1 %v2098_v22 }
 0x206   :  { %1954 = vmatprep.subr.bf16.mxu1 %v2099_v11 }
 0x207   :  { %1927 = vmatpush3.bf16.msra.mxu0 %v2806_v46  ;;  %v2091_v46 = vld [vmem:[#allocation7 + $0x28] sm:$0xff]  }
 0x208   :  { %1928 = vmatprep.subr.bf16.mxu0 %v2824_v13 }
 0x209   :  { %1955 = vmatpush3.bf16.msra.mxu1 %v2099_v11 }
 0x20a   :  { %1889 = vmatmul.mubr.msk.bf16.gmra.mrb[20].mxu0 %vm712_vm1, %v2089_v12  ;;  %1917 = vmatmul.mubr.msk.bf16.gmra.mrb[20].mxu1 %vm712_vm1, %v2089_v12 }
 0x20b   :  { %1929 = vmatpush3.bf16.msra.mxu0 %v2824_v13  ;;  %1920 = vmatprep.mubr.msk.bf16.mxu1 %vm712_vm1, %v2090_v14  ;;  %v2094_v13 = vld [vmem:[#allocation8 + $0x10] sm:$0xff]  }
 0x20c   :  { %1930 = vmatprep.subr.bf16.mxu0 %v2821_v10  ;;  %1892 = vmatprep.mubr.msk.bf16.mxu0 %vm712_vm1, %v2090_v14 }
 0x20d   :  { %1968 = vmatprep.subr.bf16.mxu1 %v2100_v18 }
 0x20f   :  { %1931 = vmatpush3.bf16.msra.mxu0 %v2821_v10  ;;  %v2093_v10 = vld [vmem:[#allocation8 + $0x8] sm:$0xff]  }
 0x210   :  { %1932 = vmatprep.subr.bf16.mxu0 %v2840_v43 }
 0x212   :  { %1893 = vmatmul.mubr.msk.bf16.gmra.mrb[24].mxu0 %vm712_vm1, %v2091_v46  ;;  %1921 = vmatmul.mubr.msk.bf16.gmra.mrb[24].mxu1 %vm712_vm1, %v2091_v46 }
 0x213   :  { %1933 = vmatpush3.bf16.msra.mxu0 %v2840_v43  ;;  %1940 = vmatprep.mubr.msk.bf16.mxu0 %vm712_vm1, %v2092_v49 }
 0x214   :  { %1934 = vmatprep.subr.bf16.mxu0 %v2837_v40 }
 0x217   :  { %1935 = vmatpush3.bf16.msra.mxu0 %v2837_v40 }
 0x218   :  { %1936 = vmatprep.subr.bf16.mxu0 %v660_v4 }
 0x21b   :  { %1937 = vmatpush3.bf16.msra.mxu0 %v660_v4 }
 0x21c   :  { %2046 = vmatprep.subr.msk.bf16.mxu0 %vm731_vm2, %v661_v3 }
 0x21f   :  { %1939 = vmatpush3.bf16.msra.mxu0 %v733_v21 }
 0x220   :  { %2000 = vmatprep.subr.bf16.mxu0 %v2104_v19 }
 0x222   :  { %1941 = vmatmul.mubr.msk.bf16.vlgmr.msra.gmra.mrb[28].mxu0 %vm712_vm1, %v2093_v10 }
 0x223   :  { %1944 = vmatprep.mubr.msk.bf16.mxu0 %vm712_vm1, %v2094_v13  ;;  %2001 = vmatpush3.bf16.msra.mxu0 %v2104_v19 }
 0x224   :  { %2002 = vmatprep.subr.bf16.mxu0 %v2105_v20 }
 0x227   :  { %2003 = vmatpush3.bf16.msra.mxu0 %v2105_v20 }
 0x228   :  { %2004 = vmatprep.subr.bf16.mxu0 %v2106_v23 }
 0x22a   :  { %1945 = vmatmul.mubr.msk.bf16.gmra.mrb[32].mxu0 %vm712_vm1, %v2095_v15  ;;  %v2107_v15 = vld [vmem:[#allocation17 + $0x18] sm:$0xff]  }
 0x22b   :  { %1948 = vmatprep.mubr.msk.bf16.mxu0 %vm712_vm1, %v2096_v16  ;;  %2005 = vmatpush3.bf16.msra.mxu0 %v2106_v23  ;;  %v1720_v16 = vld [vmem:[#allocation22] ss:$0 sm:$0xff] }
 0x22c   :  { %2006 = vmatprep.subr.bf16.mxu0 %v2107_v15 }
 0x22f   :  { %2007 = vmatpush3.bf16.msra.mxu0 %v2107_v15 }
 0x232   :  { %1949 = vmatmul.mubr.msk.bf16.gmra.mrb[36].mxu0 %vm712_vm1, %v2097_v17 }
 0x2d5   :  { %v1886_v24 = vpop.f32.mrb[16].mxu0  ;;  %v1914_v25 = vpop.f32.mrb[16].mxu1 }
 0x2d6   :  { %v769_v26 = vpop.f32.mrb[17].mxu0  ;;  %v853_v27 = vpop.f32.mrb[17].mxu1 }
 0x2d7   :  { %v1887_v28 = vpop.f32.mrb[18].mxu0  ;;  %v1915_v29 = vpop.f32.mrb[18].mxu1 }
 0x2d8   :  { %v1042_v30 = vpack.c.bf16 %v1887_v28, %v1886_v24  ;;  %v772_v31 = vpop.f32.mrb[19].mxu0  ;;  %v1052_v32 = vpack.c.bf16 %v1915_v29, %v1914_v25  ;;  %v856_v33 = vpop.f32.mrb[19].mxu1 }
 0x2d9   :  { %v1041_v34 = vpack.c.bf16 %v772_v31, %v769_v26  ;;  %v1051_v35 = vpack.c.bf16 %v856_v33, %v853_v27 }
 0x2db   :  { %1956 = vmatprep.mubr.msk.bf16.mxu1 %vm307_vm0, %v1051_v35 }
 0x2dc   :  { %1957 = vmatmul.mubr.msk.bf16.vlgmr.msra.gmra.mrb[28].mxu1 %vm307_vm0, %v1052_v32 }
 0x2dd   :  { %v1890_v37 = vpop.f32.mrb[20].mxu0  ;;  %v1918_v38 = vpop.f32.mrb[20].mxu1  ;;  %1969 = vmatpush3.bf16.msra.mxu1 %v2100_v18 }
 0x2de   :  { %v785_v39 = vpop.f32.mrb[21].mxu0  ;;  %v869_v40 = vpop.f32.mrb[21].mxu1  ;;  %1970 = vmatprep.subr.bf16.mxu1 %v2101_v36 }
 0x2df   :  { %v1891_v42 = vpop.f32.mrb[22].mxu0  ;;  %v1919_v43 = vpop.f32.mrb[22].mxu1 }
 0x2e0   :  { %v1044_v44 = vpack.c.bf16 %v1891_v42, %v1890_v37  ;;  %v788_v45 = vpop.f32.mrb[23].mxu0  ;;  %v1054_v47 = vpack.c.bf16 %v1919_v43, %v1918_v38  ;;  %v872_v48 = vpop.f32.mrb[23].mxu1 }
 0x2e1   :  { %v1043_v50 = vpack.c.bf16 %v788_v45, %v785_v39  ;;  %v1053_v51 = vpack.c.bf16 %v872_v48, %v869_v40  ;;  %1971 = vmatpush3.bf16.msra.mxu1 %v2101_v36 }
 0x2e2   :  { %1984 = vmatprep.subr.bf16.mxu1 %v2102_v41 }
 0x2e3   :  { %1960 = vmatprep.mubr.msk.bf16.mxu1 %vm307_vm0, %v1053_v51 }
 0x2e4   :  { %1961 = vmatmul.mubr.msk.bf16.gmra.mrb[32].mxu1 %vm307_vm0, %v1054_v47 }
 0x2e5   :  { %v1894_v52 = vpop.f32.mrb[24].mxu0  ;;  %v1922_v53 = vpop.f32.mrb[24].mxu1 }
 0x2e6   :  { %v801_v54 = vpop.f32.mrb[25].mxu0  ;;  %v885_v55 = vpop.f32.mrb[25].mxu1 }
 0x2e7   :  { %v1895_v56 = vpop.f32.mrb[26].mxu0  ;;  %v1923_v57 = vpop.f32.mrb[26].mxu1 }
 0x2e8   :  { %v1046_v58 = vpack.c.bf16 %v1895_v56, %v1894_v52  ;;  %v804_v59 = vpop.f32.mrb[27].mxu0  ;;  %v1056_v60 = vpack.c.bf16 %v1923_v57, %v1922_v53  ;;  %v888_v61 = vpop.f32.mrb[27].mxu1 }
 0x2e9   :  { %v1045_v62 = vpack.c.bf16 %v804_v59, %v801_v54  ;;  %v1055_v63 = vpack.c.bf16 %v888_v61, %v885_v55 }
 0x2eb   :  { %1964 = vmatprep.mubr.msk.bf16.mxu1 %vm307_vm0, %v1055_v63  ;;  %v1721_v63 = vld [vmem:[#allocation23] ss:$0 sm:$0xff] }
 0x2ec   :  { %1965 = vmatmul.mubr.msk.bf16.gmra.mrb[36].mxu1 %vm307_vm0, %v1056_v60 }
 0x2ed   :  { %1972 = vmatprep.mubr.msk.bf16.mxu1 %vm307_vm0, %v1041_v34 }
 0x2f4   :  { %1973 = vmatmul.mubr.msk.bf16.vlgmr.msra.gmra.mrb[28].mxu1 %vm307_vm0, %v1042_v30 }
 0x2f5   :  { %v1942_v1 = vpop.f32.mrb[28].mxu0  ;;  %1985 = vmatpush3.bf16.msra.mxu1 %v2102_v41  ;;  %1976 = vmatprep.mubr.msk.bf16.mxu1 %vm307_vm0, %v1043_v50 }
 0x2f6   :  { %v994_v2 = vpop.f32.mrb[29].mxu0  ;;  %1986 = vmatprep.subr.bf16.mxu1 %v2103_v0 }
 0x2f7   :  { %v1943_v3 = vpop.f32.mrb[30].mxu0 }
 0x2f8   :  { %v1284_v4 = vpack.c.bf16 %v1943_v3, %v1942_v1  ;;  %v997_v5 = vpop.f32.mrb[31].mxu0 }
 0x2f9   :  { %v1283_v6 = vpack.c.bf16 %v997_v5, %v994_v2  ;;  %1987 = vmatpush3.bf16.msra.mxu1 %v2103_v0 }
 0x2fc   :  { %1977 = vmatmul.mubr.msk.bf16.gmra.mrb[32].mxu1 %vm307_vm0, %v1044_v44 }
 0x2fd   :  { %v1946_v21 = vpop.f32.mrb[32].mxu0  ;;  %1980 = vmatprep.mubr.msk.bf16.mxu1 %vm307_vm0, %v1045_v62 }
 0x2fe   :  { %v1010_v22 = vpop.f32.mrb[33].mxu0 }
 0x2ff   :  { %v1947_v7 = vpop.f32.mrb[34].mxu0 }
 0x300   :  { %v1286_v8 = vpack.c.bf16 %v1947_v7, %v1946_v21  ;;  %v1013_v9 = vpop.f32.mrb[35].mxu0 }
 0x301   :  { %v1285_v11 = vpack.c.bf16 %v1013_v9, %v1010_v22 }
 0x304   :  { %1981 = vmatmul.mubr.msk.bf16.gmra.mrb[36].mxu1 %vm307_vm0, %v1046_v58 }
 0x305   :  { %v1950_v12 = vpop.f32.mrb[36].mxu0  ;;  %1988 = vmatprep.mubr.msk.bf16.mxu1 %vm307_vm0, %v1283_v6 }
 0x306   :  { %v1026_v14 = vpop.f32.mrb[37].mxu0 }
 0x307   :  { %v1951_v46 = vpop.f32.mrb[38].mxu0 }
 0x308   :  { %v1288_v49 = vpack.c.bf16 %v1951_v46, %v1950_v12  ;;  %v1029_v10 = vpop.f32.mrb[39].mxu0 }
 0x309   :  { %v1287_v13 = vpack.c.bf16 %v1029_v10, %v1026_v14 }
 0x30c   :  { %1989 = vmatmul.mubr.msk.bf16.vlgmr.msra.gmra.mrb[28].mxu1 %vm307_vm0, %v1284_v4 }
 0x30d   :  { %1992 = vmatprep.mubr.msk.bf16.mxu1 %vm307_vm0, %v1285_v11 }
 0x314   :  { %1993 = vmatmul.mubr.msk.bf16.gmra.mrb[32].mxu1 %vm307_vm0, %v1286_v8 }
 0x315   :  { %1996 = vmatprep.mubr.msk.bf16.mxu1 %vm307_vm0, %v1287_v13 }
 0x31c   :  { %1997 = vmatmul.mubr.msk.bf16.gmra.mrb[36].mxu1 %vm307_vm0, %v1288_v49 }
 0x3df   :  { %v1990_v17 = vpop.f32.mrb[28].mxu1 }
 0x3e0   :  { %v1425_v18 = vadd.f32 %v1990_v17, %v1720_v16  ;;  %v1357_v19 = vpop.f32.mrb[29].mxu1 }
 0x3e1   :  { %v1423_v20 = vadd.f32 %v1720_v16, %v1357_v19  ;;  %v1991_v23 = vpop.f32.mrb[30].mxu1 }
 0x3e2   :  { %v1426_v24 = vadd.f32 %v1991_v23, %v1720_v16  ;;  %v1360_v25 = vpop.f32.mrb[31].mxu1  ;;  %v1437_v27 = vmax.f32 %v1425_v18, 0.0 }
 0x3e3   :  { %v1424_v26 = vadd.f32 %v1720_v16, %v1360_v25  ;;  %v1435_v29 = vmax.f32 %v1423_v20, 0.0 }
 0x3e4   :  { %v1438_v28 = vmax.f32 %v1426_v24, 0.0 }
 0x3e5   :  { %v1436_v30 = vmax.f32 %v1424_v26, 0.0 }
 0x3e6   :  { %v1448_v31 = vpack.c.bf16 %v1438_v28, %v1437_v27 }
 0x3e7   :  { %v1447_v32 = vpack.c.bf16 %v1436_v30, %v1435_v29  ;;  %v1994_v33 = vpop.f32.mrb[32].mxu1 }
 0x3e8   :  { %v1429_v34 = vadd.f32 %v1994_v33, %v1720_v16  ;;  %v1373_v35 = vpop.f32.mrb[33].mxu1 }
 0x3e9   :  { %v1427_v36 = vadd.f32 %v1720_v16, %v1373_v35  ;;  %v1995_v37 = vpop.f32.mrb[34].mxu1  ;;  %2008 = vmatprep.mubr.msk.bf16.mxu0 %vm1492_vm3, %v1447_v32 }
 0x3ea   :  { %v1430_v38 = vadd.f32 %v1995_v37, %v1720_v16  ;;  %v1376_v39 = vpop.f32.mrb[35].mxu1  ;;  %2009 = vmatmul.mubr.msk.bf16.vlgmr.msra.gmra.mrb[40].mxu0 %vm1492_vm3, %v1448_v31  ;;  %v1441_v41 = vmax.f32 %v1429_v34, 0.0 }
 0x3eb   :  { %v1428_v40 = vadd.f32 %v1720_v16, %v1376_v39  ;;  %v1439_v43 = vmax.f32 %v1427_v36, 0.0 }
 0x3ec   :  { %v1442_v42 = vmax.f32 %v1430_v38, 0.0 }
 0x3ed   :  { %v1440_v44 = vmax.f32 %v1428_v40, 0.0 }
 0x3ee   :  { %v1450_v45 = vpack.c.bf16 %v1442_v42, %v1441_v41 }
 0x3ef   :  { %v1449_v47 = vpack.c.bf16 %v1440_v44, %v1439_v43  ;;  %v1998_v48 = vpop.f32.mrb[36].mxu1 }
 0x3f0   :  { %v1433_v50 = vadd.f32 %v1998_v48, %v1720_v16  ;;  %v1389_v51 = vpop.f32.mrb[37].mxu1 }
 0x3f1   :  { %v1431_v52 = vadd.f32 %v1720_v16, %v1389_v51  ;;  %v1999_v53 = vpop.f32.mrb[38].mxu1  ;;  %2012 = vmatprep.mubr.msk.bf16.mxu0 %vm1492_vm3, %v1449_v47 }
 0x3f2   :  { %v1434_v54 = vadd.f32 %v1999_v53, %v1720_v16  ;;  %v1392_v55 = vpop.f32.mrb[39].mxu1  ;;  %2013 = vmatmul.mubr.msk.bf16.gmra.mrb[44].mxu0 %vm1492_vm3, %v1450_v45  ;;  %v1445_v57 = vmax.f32 %v1433_v50, 0.0 }
 0x3f3   :  { %v1432_v56 = vadd.f32 %v1720_v16, %v1392_v55  ;;  %v1443_v59 = vmax.f32 %v1431_v52, 0.0 }
 0x3f4   :  { %v1446_v58 = vmax.f32 %v1434_v54, 0.0 }
 0x3f5   :  { %v1444_v60 = vmax.f32 %v1432_v56, 0.0 }
 0x3f6   :  { %v1452_v61 = vpack.c.bf16 %v1446_v58, %v1445_v57 }
 0x3f7   :  { %v1451_v62 = vpack.c.bf16 %v1444_v60, %v1443_v59 }
 0x3f9   :  { %2016 = vmatprep.mubr.msk.bf16.mxu0 %vm1492_vm3, %v1451_v62 }
 0x3fa   :  { %2017 = vmatmul.mubr.msk.bf16.gmra.mrb[48].mxu0 %vm1492_vm3, %v1452_v61 }
 0x4bd   :  { %v2010_v0 = vpop.f32.mrb[40].mxu0 }
 0x4be   :  { %v1554_v1 = vadd.f32 %v2010_v0, %v1721_v63  ;;  %v1545_v2 = vpop.f32.mrb[41].mxu0 }
 0x4bf   :  { %v1546_v3 = vadd.f32 %v1721_v63, %v1545_v2  ;;  %v2011_v4 = vpop.f32.mrb[42].mxu0 }
 0x4c0   :  { %1594 = vst [vmem:[#allocation25 + $0x10] sm:$0xff] %v1554_v1  ;;  %v1557_v5 = vadd.f32 %v2011_v4, %v1721_v63  ;;  %v1548_v6 = vpop.f32.mrb[43].mxu0 }
 0x4c1   :  { %1592 = vst [vmem:[#allocation25] sm:$0xff] %v1546_v3  ;;  %v1549_v21 = vadd.f32 %v1721_v63, %v1548_v6 }
 0x4c2   :  { %1595 = vst [vmem:[#allocation25 + $0x18] sm:$0xff] %v1557_v5 }
 0x4c3   :  { %1593 = vst [vmem:[#allocation25 + $0x8] sm:$0xff] %v1549_v21 }
 0x4c5   :  { %v2014_v22 = vpop.f32.mrb[44].mxu0 }
 0x4c6   :  { %v1570_v7 = vadd.f32 %v2014_v22, %v1721_v63  ;;  %v1561_v8 = vpop.f32.mrb[45].mxu0 }
 0x4c7   :  { %v1562_v9 = vadd.f32 %v1721_v63, %v1561_v8  ;;  %v2015_v11 = vpop.f32.mrb[46].mxu0 }
 0x4c8   :  { %1598 = vst [vmem:[#allocation25 + $0x30] sm:$0xff] %v1570_v7  ;;  %v1573_v12 = vadd.f32 %v2015_v11, %v1721_v63  ;;  %v1564_v14 = vpop.f32.mrb[47].mxu0 }
 0x4c9   :  { %1596 = vst [vmem:[#allocation25 + $0x20] sm:$0xff] %v1562_v9  ;;  %v1565_v46 = vadd.f32 %v1721_v63, %v1564_v14 }
 0x4ca   :  { %1599 = vst [vmem:[#allocation25 + $0x38] sm:$0xff] %v1573_v12 }
 0x4cb   :  { %1597 = vst [vmem:[#allocation25 + $0x28] sm:$0xff] %v1565_v46 }
 0x4cd   :  { %v2018_v49 = vpop.f32.mrb[48].mxu0 }
 0x4ce   :  { %v1586_v10 = vadd.f32 %v2018_v49, %v1721_v63  ;;  %v1577_v13 = vpop.f32.mrb[49].mxu0 }
 0x4cf   :  { %v1578_v15 = vadd.f32 %v1721_v63, %v1577_v13  ;;  %v2019_v16 = vpop.f32.mrb[50].mxu0 }
 0x4d0   :  { %1602 = vst [vmem:[#allocation25 + $0x50] sm:$0xff] %v1586_v10  ;;  %v1589_v17 = vadd.f32 %v2019_v16, %v1721_v63  ;;  %v1580_v18 = vpop.f32.mrb[51].mxu0 }
 0x4d1   :  { %1600 = vst [vmem:[#allocation25 + $0x40] sm:$0xff] %v1578_v15  ;;  %v1581_v19 = vadd.f32 %v1721_v63, %v1580_v18 }
 0x4d2   :  { %1603 = vst [vmem:[#allocation25 + $0x58] sm:$0xff] %v1589_v17 }
 0x4d3   :  { %1601 = vst [vmem:[#allocation25 + $0x48] sm:$0xff] %v1581_v19 }
 0x4d4   :  { %2427 = shalt.err (!%p2424_p4)
}
 0x4d5   :  { %s2428_s7 = scalar_lea.hbm %s2935_s14, 1536 }
 0x4d6   :  { %p2429_p5 = scmp.ne.s32.totalorder %s2935_s14, %s2428_s7  ;;  %p2432_p6 = scmp.lt.u32.totalorder %s2428_s7, %s2935_s14 }
 0x4d8   :  { %p2434_p7 = pnand %p2432_p6, %p2429_p5 }
 0x4da   :  { %2437 = shalt.err (!%p2434_p7)
}
 0x4db   :  { %s2473_s11 = smov 128   ;;  %s2474_s3 = smov 8  }
 0x4dc   :  { %1615 = dma.vmem_to_hbm [thread:$0]  %s1610_s4, 1536, %s2935_s14, [#allocation4], %s2473_s11, %s2473_s11, %s2474_s3  }
 0x4dd   :  { %2454 = dma.done.wait [#allocation4], 1536  }
 0x4de   :  { %2455 = vsyncadd [#allocation4], 4294965760 }
 0x4df   :  { %1619 = vsyncpa [#allocation3], 1 }
 0x4e0   :  { %1620 = vsyncpa [#allocation6], 1 }
 0x4e1   :  { %1621 = vsyncpa [#allocation9], 1 }
 0x4e2   :  { %1622 = vsyncpa [#allocation12], 1 }
 0x4e3   :  { %1623 = vsyncpa [#allocation15], 1 }
 0x4e4   :  { %1624 = vsyncpa [#allocation18], 1 }
 0x4e5   :  { %1625 = vsyncpa [#allocation21], 1 }
 0x4e6   :  { %1626 = vsyncpa [#allocation24], 1 }
 0x4e7   :  { %1627 = vsyncpa [#allocation4], 1 }

</bundles_post_ra>
